<compile_context>
chip_gen: v7x
topology: tpu7x:2x2x1
jax: 0.10.0
libtpu: 0.0.40
codegen_flags: <defaults>
</compile_context>

<pallas_src>
import numpy as np
import jax
import jax.numpy as jnp
from jax import lax
from jax.experimental import pallas as pl
from jax.experimental.pallas import tpu as pltpu


def _allowed_taps(kh, kw, mask_type):
    """(ki, kj) kernel positions NOT zeroed by the autoregressive mask."""
    keep = []
    for ki in range(kh):
        for kj in range(kw):
            if ki < kh // 2 or (ki == kh // 2 and
                                kj < kw // 2 + (1 if mask_type == "B" else 0)):
                keep.append((ki, kj))
    return tuple(keep)


A_TAPS_7 = _allowed_taps(7, 7, "A")   # 24 of 49 taps survive mask 'A'
B_TAPS_3 = _allowed_taps(3, 3, "B")   # 5 of 9 taps survive mask 'B'
                                      # order: (-1,-1),(-1,0),(-1,+1),(0,-1),(0,0)


# ------------------------------ fused kernel --------------------------------

def _make_fused_kernel(H, W, M, h, nblk):
    """M = images_per_step * H * W pixels on the lane axis."""
    HW = H * W

    def kernel(patch_ref, fw_ref, fb_ref,
               w1_ref, b1_ref, w2_ref, b2_ref, w3_ref, b3_ref,
               tw_ref, tb_ref, ew_ref, eb_ref,
               logits_ref, probs_ref):
        bf16 = jnp.bfloat16

        def mm(w, x):
            # w already bf16; cast the activation, accumulate in f32 (MXU).
            return jnp.dot(w, x.astype(bf16), preferred_element_type=jnp.float32)

        # Per-lane pixel-position masks (zero-padding at image borders).
        # Correct even with several images folded onto the lane axis: any
        # lane whose rolled read would leak across an image boundary is a
        # border lane and is zeroed by these masks.
        lane = lax.broadcasted_iota(jnp.int32, (h, M), 1)
        col = lane % W
        not_row0 = (lane % HW) >= W          # pixel not in image row 0
        not_col0 = col != 0                  # pixel not in image column 0
        not_collast = col != (W - 1)         # pixel not in last column
        m_ul = not_row0 & not_col0
        m_ur = not_row0 & not_collast

        # ---- first layer: masked 7x7 'A' conv == one matmul over 24 live taps
        y = mm(fw_ref[...], patch_ref[...]) + fb_ref[...]           # [2h, M] f32

        # ---- residual blocks: ReLU->1x1->ReLU->masked3x3'B'->ReLU->1x1 (+skip)
        for blk in range(nblk):
            z1 = mm(w1_ref[blk], jnp.maximum(y, 0.0)) + b1_ref[blk]   # [h, M]
            a = jnp.maximum(z1, 0.0)
            # Masked 3x3 'B' conv: 5 lane-rolled + border-masked copies of `a`
            # stacked along K (tap order == B_TAPS_3), single [h,5h]x[5h,M].
            taps = [
                jnp.where(m_ul, pltpu.roll(a, W + 1, axis=1), 0.0),   # (-1,-1)
                jnp.where(not_row0, pltpu.roll(a, W, axis=1), 0.0),   # (-1, 0)
                jnp.where(m_ur, pltpu.roll(a, W - 1, axis=1), 0.0),   # (-1,+1)
                jnp.where(not_col0, pltpu.roll(a, 1, axis=1), 0.0),   # ( 0,-1)
                a,                                                    # ( 0, 0)
            ]
            x5 = jnp.concatenate(taps, axis=0).astype(bf16)           # [5h, M]
            z2 = jnp.dot(w2_ref[blk], x5,
                         preferred_element_type=jnp.float32) + b2_ref[blk]
            y = y + mm(w3_ref[blk], jnp.maximum(z2, 0.0)) + b3_ref[blk]

        # ---- top layer: ReLU -> 1x1 -> ReLU
        top = jnp.maximum(mm(tw_ref[...], jnp.maximum(y, 0.0)) + tb_ref[...],
                          0.0)                                        # [d, M]

        # ---- evidence 1x1 + softmax over the 256 value channels (sublanes)
        logits = mm(ew_ref[...], top) + eb_ref[...]                   # [256, M]
        logits_ref[...] = logits
        m = jnp.max(logits, axis=0, keepdims=True)
        e = jnp.exp(logits - m)
        s = jnp.sum(e, axis=0, keepdims=True)
        inv = pl.reciprocal(s, approx=True)      # EUP slot, no VALU divide
        inv = inv * (2.0 - s * inv)              # one Newton step -> ~f32 exact
        probs_ref[...] = e * inv

    return kernel


# ------------------------------ host wrapper --------------------------------

def pixelcnn_forward(x_nchw, prep, images_per_step=None):
    """Fused PixelCNN forward (bn=False).  Returns (logits, softmax) in NCHW."""
    N, C, H, W = x_nchw.shape
    assert C == 1
    HW = H * W

    # At most 2 grid steps: both v7x TensorCores stay busy, while v5e/v6e
    # (single TC) amortize the per-step overhead over a whole batch tile.
    if images_per_step is None:
        images_per_step = (N + 1) // 2
    assert N % images_per_step == 0
    steps = N // images_per_step
    M_step = images_per_step * HW
    assert M_step % 128 == 0, "images_per_step*H*W must be a multiple of 128"

    k7 = prep["first_w"].shape[1]          # 24 live taps of the 7x7 'A' conv
    h = prep["w1"].shape[1]
    nblk = prep["w1"].shape[0]

    # Host-side gather of the 24 live taps (Cin=1) -> transposed [24, N*HW].
    xpad = jnp.pad(x_nchw[:, 0, :, :], ((0, 0), (3, 3), (3, 3)))
    patches = jnp.stack(
        [xpad[:, ki:ki + H, kj:kj + W] for (ki, kj) in A_TAPS_7], axis=1
    ).reshape(N, k7, HW)
    patches_t = patches.transpose(1, 0, 2).reshape(k7, N * HW)

    def whole(arr):
        nd = arr.ndim
        return pl.BlockSpec(arr.shape, lambda b, _nd=nd: (0,) * _nd)

    weight_order = ("first_w", "first_b", "w1", "b1", "w2", "b2",
                    "w3", "b3", "top_w", "top_b", "ev_w", "ev_b")
    weights = [prep[k] for k in weight_order]

    kernel = _make_fused_kernel(H, W, M_step, h, nblk)
    logits_t, probs_t = pl.pallas_call(
        kernel,
        out_shape=(jax.ShapeDtypeStruct((256, N * HW), jnp.float32),
                   jax.ShapeDtypeStruct((256, N * HW), jnp.float32)),
        grid_spec=pltpu.PrefetchScalarGridSpec(
            num_scalar_prefetch=0,
            grid=(steps,),                       # one batch tile per step
            in_specs=([pl.BlockSpec((k7, M_step), lambda b: (0, b))]
                      + [whole(w) for w in weights]),
            out_specs=(pl.BlockSpec((256, M_step), lambda b: (0, b)),
                       pl.BlockSpec((256, M_step), lambda b: (0, b))),
        ),
        compiler_params=pltpu.CompilerParams(
            dimension_semantics=("parallel",)),
    )(patches_t, *weights)

    logits = logits_t.reshape(256, N, H, W).transpose(1, 0, 2, 3)
    probs = probs_t.reshape(256, N, H, W).transpose(1, 0, 2, 3)
    return logits, probs


# --------------------- params: init & one-time preparation ------------------

def _kaiming(key, cout, cin, kh, kw):
    std = np.sqrt(2.0 / (cin * kh * kw)).astype(np.float32)
    return jax.random.normal(key, (cout, cin, kh, kw), jnp.float32) * std


def init_pixelcnn_params(key, h, n, d):
    keys = iter(jax.random.split(key, 6 * (n + 1) + 8))
    params = {
        "first_w": _kaiming(next(keys), 2 * h, 1, 7, 7),
        "first_b": jax.random.normal(next(keys), (2 * h,), jnp.float32) * 0.01,
    }
    blocks = []
    for _ in range(n + 1):
        blocks.append({
            "w1": _kaiming(next(keys), h, 2 * h, 1, 1),
            "b1": jax.random.normal(next(keys), (h,), jnp.float32) * 0.01,
            "w2": _kaiming(next(keys), h, h, 3, 3),
            "b2": jax.random.normal(next(keys), (h,), jnp.float32) * 0.01,
            "w3": _kaiming(next(keys), 2 * h, h, 1, 1),
            "b3": jax.random.normal(next(keys), (2 * h,), jnp.float32) * 0.01,
        })
    params["blocks"] = blocks
    params["top_w"] = _kaiming(next(keys), d, 2 * h, 1, 1)
    params["top_b"] = jax.random.normal(next(keys), (d,), jnp.float32) * 0.01
    params["ev_w"] = _kaiming(next(keys), 256, d, 1, 1)
    params["ev_b"] = jax.random.normal(next(keys), (256,), jnp.float32) * 0.01
    return params


def prepare_params(params, compute_dtype=jnp.bfloat16):
    """Pre-mask, stack, and transpose every conv weight for Y^T = W X^T form.

    Weight matrices are stored bf16 (MXU operands); biases stay f32 [C, 1].
    The 5 live taps of every masked 3x3 'B' conv are pre-stacked along K so
    the kernel issues a single matmul per residual block.
    """
    f32 = jnp.float32
    prep = {
        "first_w": jnp.stack([params["first_w"][:, 0, ki, kj]
                              for ki, kj in A_TAPS_7],
                             axis=1).astype(compute_dtype),       # [2h, 24]
        "first_b": params["first_b"].reshape(-1, 1).astype(f32),  # [2h, 1]
    }
    w1, b1, w2, b2, w3, b3 = [], [], [], [], [], []
    for blk in params["blocks"]:
        w1.append(blk["w1"][:, :, 0, 0])                          # [h, 2h]
        b1.append(blk["b1"].reshape(-1, 1))
        w2.append(jnp.concatenate([blk["w2"][:, :, ki, kj]
                                   for ki, kj in B_TAPS_3], axis=1))  # [h, 5h]
        b2.append(blk["b2"].reshape(-1, 1))
        w3.append(blk["w3"][:, :, 0, 0])                          # [2h, h]
        b3.append(blk["b3"].reshape(-1, 1))
    prep["w1"] = jnp.stack(w1).astype(compute_dtype)   # [nblk, h, 2h]
    prep["b1"] = jnp.stack(b1).astype(f32)             # [nblk, h, 1]
    prep["w2"] = jnp.stack(w2).astype(compute_dtype)   # [nblk, h, 5h]
    prep["b2"] = jnp.stack(b2).astype(f32)             # [nblk, h, 1]
    prep["w3"] = jnp.stack(w3).astype(compute_dtype)   # [nblk, 2h, h]
    prep["b3"] = jnp.stack(b3).astype(f32)             # [nblk, 2h, 1]
    prep["top_w"] = params["top_w"][:, :, 0, 0].astype(compute_dtype)  # [d, 2h]
    prep["top_b"] = params["top_b"].reshape(-1, 1).astype(f32)
    prep["ev_w"] = params["ev_w"][:, :, 0, 0].astype(compute_dtype)    # [256, d]
    prep["ev_b"] = params["ev_b"].reshape(-1, 1).astype(f32)
    return prep


# ------------------------- plain-XLA reference path -------------------------

def _conv_mask_oihw(cout, cin, kh, kw, mask_type):
    m = np.ones((cout, cin, kh, kw), np.float32)
    m[:, :, kh // 2, kw // 2 + (1 if mask_type == "B" else 0):] = 0
    m[:, :, kh // 2 + 1:, :] = 0
    return jnp.asarray(m)


def _conv_nhwc(x, w_oihw, b, mask=None):
    w = w_oihw if mask is None else w_oihw * mask
    w_hwio = jnp.transpose(w, (2, 3, 1, 0))
    y = lax.conv_general_dilated(
        x, w_hwio, window_strides=(1, 1), padding="SAME",
        dimension_numbers=("NHWC", "HWIO", "NHWC"),
        precision=lax.Precision.HIGHEST)
    return y + b.reshape(1, 1, 1, -1)


def pixelcnn_reference(x_nchw, params):
    """Independent plain-JAX reference of the PyTorch forward (bn=False)."""
    h = params["first_w"].shape[0] // 2
    x = jnp.transpose(x_nchw, (0, 2, 3, 1))
    y = _conv_nhwc(x, params["first_w"], params["first_b"],
                   _conv_mask_oihw(2 * h, 1, 7, 7, "A"))
    mask_b = _conv_mask_oihw(h, h, 3, 3, "B")
    for blk in params["blocks"]:
        z = _conv_nhwc(jax.nn.relu(y), blk["w1"], blk["b1"])
        z = _conv_nhwc(jax.nn.relu(z), blk["w2"], blk["b2"], mask_b)
        z = _conv_nhwc(jax.nn.relu(z), blk["w3"], blk["b3"])
        y = y + z
    t = jax.nn.relu(_conv_nhwc(jax.nn.relu(y), params["top_w"],
                               params["top_b"]))
    logits = _conv_nhwc(t, params["ev_w"], params["ev_b"])
    probs = jax.nn.softmax(logits, axis=-1)
    return (jnp.transpose(logits, (0, 3, 1, 2)),
            jnp.transpose(probs, (0, 3, 1, 2)))


# ----------------------------------- main ------------------------------------

if __name__ == "__main__":
    h, n, d = 8, 1, 16            # PixelCNN(h=8, n=1, d=16, bn=False)
    N, H, W = 2, 16, 16
    key = jax.random.PRNGKey(0)
    kx, kp = jax.random.split(key)
    x = jax.random.uniform(kx, (N, 1, H, W), jnp.float32)   # NCHW, 1 channel
    params = init_pixelcnn_params(kp, h, n, d)

    prep = prepare_params(params)               # masked/stacked bf16 weights, once
    logits, probs = jax.jit(pixelcnn_forward)(x, prep)
    jax.block_until_ready((logits, probs))

    assert logits.shape == (N, 256, H, W) and probs.shape == (N, 256, H, W)
    assert bool(jnp.all(jnp.isfinite(logits)))
    assert bool(jnp.allclose(jnp.sum(probs, axis=1), 1.0, atol=1e-3))

    # Cross-check against the independent f32 XLA reference (tolerance covers
    # the bf16 MXU operands used inside the fused kernel).
    ref_logits, ref_probs = jax.jit(pixelcnn_reference)(x, params)
    scale = float(jnp.max(jnp.abs(ref_logits))) + 1e-6
    assert float(jnp.max(jnp.abs(logits - ref_logits))) / scale < 1e-1
    assert float(jnp.max(jnp.abs(probs - ref_probs))) < 1e-2
    print("KERNEL_OK")
</pallas_src>

<mosaic_0001>
module attributes {stable_mosaic.version = 11 : i64} {
  func.func @kernel(%arg0: i32, %arg1: memref<24x256xf32, #tpu.memory_space<vmem>>, %arg2: memref<16x24xbf16, #tpu.memory_space<vmem>>, %arg3: memref<16x1xf32, #tpu.memory_space<vmem>>, %arg4: memref<2x8x16xbf16, #tpu.memory_space<vmem>>, %arg5: memref<2x8x1xf32, #tpu.memory_space<vmem>>, %arg6: memref<2x8x40xbf16, #tpu.memory_space<vmem>>, %arg7: memref<2x8x1xf32, #tpu.memory_space<vmem>>, %arg8: memref<2x16x8xbf16, #tpu.memory_space<vmem>>, %arg9: memref<2x16x1xf32, #tpu.memory_space<vmem>>, %arg10: memref<16x16xbf16, #tpu.memory_space<vmem>>, %arg11: memref<16x1xf32, #tpu.memory_space<vmem>>, %arg12: memref<256x16xbf16, #tpu.memory_space<vmem>>, %arg13: memref<256x1xf32, #tpu.memory_space<vmem>>, %arg14: memref<256x256xf32, #tpu.memory_space<vmem>>, %arg15: memref<256x256xf32, #tpu.memory_space<vmem>>) attributes {dimension_semantics = [#tpu.dimension_semantics<parallel>], iteration_bounds = array<i64: 2>, scalar_prefetch = 0 : i64, scratch_operands = 0 : i64, tpu.core_type = #tpu.core_type<tc>, window_params = [{transform_indices = @transform_0, window_bounds = array<i64: 24, 256>}, {pipeline_mode = #tpu.pipeline_mode<synchronous>, transform_indices = @transform_1, window_bounds = array<i64: 16, 24>}, {pipeline_mode = #tpu.pipeline_mode<synchronous>, transform_indices = @transform_2, window_bounds = array<i64: 16, 1>}, {pipeline_mode = #tpu.pipeline_mode<synchronous>, transform_indices = @transform_3, window_bounds = array<i64: 2, 8, 16>}, {pipeline_mode = #tpu.pipeline_mode<synchronous>, transform_indices = @transform_4, window_bounds = array<i64: 2, 8, 1>}, {pipeline_mode = #tpu.pipeline_mode<synchronous>, transform_indices = @transform_5, window_bounds = array<i64: 2, 8, 40>}, {pipeline_mode = #tpu.pipeline_mode<synchronous>, transform_indices = @transform_6, window_bounds = array<i64: 2, 8, 1>}, {pipeline_mode = #tpu.pipeline_mode<synchronous>, transform_indices = @transform_7, window_bounds = array<i64: 2, 16, 8>}, {pipeline_mode = #tpu.pipeline_mode<synchronous>, transform_indices = @transform_8, window_bounds = array<i64: 2, 16, 1>}, {pipeline_mode = #tpu.pipeline_mode<synchronous>, transform_indices = @transform_9, window_bounds = array<i64: 16, 16>}, {pipeline_mode = #tpu.pipeline_mode<synchronous>, transform_indices = @transform_10, window_bounds = array<i64: 16, 1>}, {pipeline_mode = #tpu.pipeline_mode<synchronous>, transform_indices = @transform_11, window_bounds = array<i64: 256, 16>}, {pipeline_mode = #tpu.pipeline_mode<synchronous>, transform_indices = @transform_12, window_bounds = array<i64: 256, 1>}, {transform_indices = @transform_13, window_bounds = array<i64: 256, 256>}, {transform_indices = @transform_14, window_bounds = array<i64: 256, 256>}]} {
    %0 = tpu.iota {dimensions = array<i32: 1>} : vector<8x256xi32>
    %c16_i32 = arith.constant 16 : i32
    %c0_i32 = arith.constant 0 : i32
    %1 = arith.cmpi eq, %c16_i32, %c0_i32 : i32
    %c1_i32 = arith.constant 1 : i32
    %2 = arith.select %1, %c1_i32, %c16_i32 : i32
    %3 = vector.broadcast %2 : i32 to vector<8x256xi32>
    %4 = arith.remsi %0, %3 : vector<8x256xi32>
    %c0_i32_0 = arith.constant 0 : i32
    %5 = vector.broadcast %c0_i32_0 : i32 to vector<8x256xi32>
    %6 = arith.cmpi ne, %4, %5 : vector<8x256xi32>
    %c0_i32_1 = arith.constant 0 : i32
    %7 = vector.broadcast %c0_i32_1 : i32 to vector<8x256xi32>
    %8 = arith.cmpi slt, %4, %7 : vector<8x256xi32>
    %c0_i32_2 = arith.constant 0 : i32
    %9 = arith.cmpi slt, %2, %c0_i32_2 : i32
    %10 = vector.broadcast %9 : i1 to vector<8x256xi1>
    %11 = vector.broadcast %10 : vector<8x256xi1> to vector<8x256xi1>
    %12 = arith.xori %8, %11 : vector<8x256xi1>
    %13 = arith.andi %12, %6 : vector<8x256xi1>
    %14 = vector.broadcast %2 : i32 to vector<8x256xi32>
    %15 = arith.addi %4, %14 : vector<8x256xi32>
    %16 = arith.select %13, %15, %4 : vector<8x256xi1>, vector<8x256xi32>
    %c256_i32 = arith.constant 256 : i32
    %c0_i32_3 = arith.constant 0 : i32
    %17 = arith.cmpi eq, %c256_i32, %c0_i32_3 : i32
    %c1_i32_4 = arith.constant 1 : i32
    %18 = arith.select %17, %c1_i32_4, %c256_i32 : i32
    %19 = vector.broadcast %18 : i32 to vector<8x256xi32>
    %20 = arith.remsi %0, %19 : vector<8x256xi32>
    %c0_i32_5 = arith.constant 0 : i32
    %21 = vector.broadcast %c0_i32_5 : i32 to vector<8x256xi32>
    %22 = arith.cmpi ne, %20, %21 : vector<8x256xi32>
    %c0_i32_6 = arith.constant 0 : i32
    %23 = vector.broadcast %c0_i32_6 : i32 to vector<8x256xi32>
    %24 = arith.cmpi slt, %20, %23 : vector<8x256xi32>
    %c0_i32_7 = arith.constant 0 : i32
    %25 = arith.cmpi slt, %18, %c0_i32_7 : i32
    %26 = vector.broadcast %25 : i1 to vector<8x256xi1>
    %27 = vector.broadcast %26 : vector<8x256xi1> to vector<8x256xi1>
    %28 = arith.xori %24, %27 : vector<8x256xi1>
    %29 = arith.andi %28, %22 : vector<8x256xi1>
    %30 = vector.broadcast %18 : i32 to vector<8x256xi32>
    %31 = arith.addi %20, %30 : vector<8x256xi32>
    %32 = arith.select %29, %31, %20 : vector<8x256xi1>, vector<8x256xi32>
    %c16_i32_8 = arith.constant 16 : i32
    %33 = vector.broadcast %c16_i32_8 : i32 to vector<8x256xi32>
    %34 = arith.cmpi sge, %32, %33 : vector<8x256xi32>
    %c0_i32_9 = arith.constant 0 : i32
    %35 = vector.broadcast %c0_i32_9 : i32 to vector<8x256xi32>
    %36 = arith.cmpi ne, %16, %35 : vector<8x256xi32>
    %c15_i32 = arith.constant 15 : i32
    %37 = vector.broadcast %c15_i32 : i32 to vector<8x256xi32>
    %38 = arith.cmpi ne, %16, %37 : vector<8x256xi32>
    %39 = arith.andi %34, %36 : vector<8x256xi1>
    %40 = arith.andi %34, %38 : vector<8x256xi1>
    %c0 = arith.constant 0 : index
    %c0_10 = arith.constant 0 : index
    %41 = vector.load %arg2[%c0, %c0_10] : memref<16x24xbf16, #tpu.memory_space<vmem>>, vector<16x24xbf16>
    %c0_11 = arith.constant 0 : index
    %c0_12 = arith.constant 0 : index
    %42 = vector.load %arg1[%c0_11, %c0_12] : memref<24x256xf32, #tpu.memory_space<vmem>>, vector<24x256xf32>
    %43 = arith.truncf %42 : vector<24x256xf32> to vector<24x256xbf16>
    %cst = arith.constant dense<0.000000e+00> : vector<16x256xf32>
    %44 = tpu.matmul %41, %43, %cst {dimension_numbers = #tpu.dot_dimension_numbers<[1], [0], [0], [1], [0, 0, 1, 1], [], []>} : vector<16x24xbf16>, vector<24x256xbf16>, vector<16x256xf32> -> vector<16x256xf32>
    %c0_13 = arith.constant 0 : index
    %c0_14 = arith.constant 0 : index
    %45 = vector.load %arg3[%c0_13, %c0_14] : memref<16x1xf32, #tpu.memory_space<vmem>>, vector<16x1xf32>
    %46 = vector.broadcast %45 : vector<16x1xf32> to vector<16x256xf32>
    %47 = arith.addf %44, %46 : vector<16x256xf32>
    %c0_15 = arith.constant 0 : index
    %c0_16 = arith.constant 0 : index
    %c0_17 = arith.constant 0 : index
    %48 = vector.load %arg4[%c0_15, %c0_16, %c0_17] : memref<2x8x16xbf16, #tpu.memory_space<vmem>>, vector<1x8x16xbf16>
    %49 = vector.shape_cast %48 : vector<1x8x16xbf16> to vector<8x16xbf16>
    %cst_18 = arith.constant 0.000000e+00 : f32
    %50 = vector.broadcast %cst_18 : f32 to vector<16x256xf32>
    %51 = arith.maximumf %47, %50 : vector<16x256xf32>
    %52 = arith.truncf %51 : vector<16x256xf32> to vector<16x256xbf16>
    %cst_19 = arith.constant dense<0.000000e+00> : vector<8x256xf32>
    %53 = tpu.matmul %49, %52, %cst_19 {dimension_numbers = #tpu.dot_dimension_numbers<[1], [0], [0], [1], [0, 0, 1, 1], [], []>} : vector<8x16xbf16>, vector<16x256xbf16>, vector<8x256xf32> -> vector<8x256xf32>
    %c0_20 = arith.constant 0 : index
    %c0_21 = arith.constant 0 : index
    %c0_22 = arith.constant 0 : index
    %54 = vector.load %arg5[%c0_20, %c0_21, %c0_22] : memref<2x8x1xf32, #tpu.memory_space<vmem>>, vector<1x8x1xf32>
    %55 = vector.shape_cast %54 : vector<1x8x1xf32> to vector<8x1xf32>
    %56 = vector.broadcast %55 : vector<8x1xf32> to vector<8x256xf32>
    %57 = arith.addf %53, %56 : vector<8x256xf32>
    %cst_23 = arith.constant 0.000000e+00 : f32
    %58 = vector.broadcast %cst_23 : f32 to vector<8x256xf32>
    %59 = arith.maximumf %57, %58 : vector<8x256xf32>
    %c17_i32 = arith.constant 17 : i32
    %60 = tpu.dynamic_rotate %59 by %c17_i32 dim 1 : vector<8x256xf32>, i32 -> vector<8x256xf32>
    %cst_24 = arith.constant 0.000000e+00 : f32
    %61 = vector.broadcast %cst_24 : f32 to vector<8x256xf32>
    %62 = arith.select %39, %60, %61 : vector<8x256xi1>, vector<8x256xf32>
    %c16_i32_25 = arith.constant 16 : i32
    %63 = tpu.dynamic_rotate %59 by %c16_i32_25 dim 1 : vector<8x256xf32>, i32 -> vector<8x256xf32>
    %cst_26 = arith.constant 0.000000e+00 : f32
    %64 = vector.broadcast %cst_26 : f32 to vector<8x256xf32>
    %65 = arith.select %34, %63, %64 : vector<8x256xi1>, vector<8x256xf32>
    %c15_i32_27 = arith.constant 15 : i32
    %66 = tpu.dynamic_rotate %59 by %c15_i32_27 dim 1 : vector<8x256xf32>, i32 -> vector<8x256xf32>
    %cst_28 = arith.constant 0.000000e+00 : f32
    %67 = vector.broadcast %cst_28 : f32 to vector<8x256xf32>
    %68 = arith.select %40, %66, %67 : vector<8x256xi1>, vector<8x256xf32>
    %c1_i32_29 = arith.constant 1 : i32
    %69 = tpu.dynamic_rotate %59 by %c1_i32_29 dim 1 : vector<8x256xf32>, i32 -> vector<8x256xf32>
    %cst_30 = arith.constant 0.000000e+00 : f32
    %70 = vector.broadcast %cst_30 : f32 to vector<8x256xf32>
    %71 = arith.select %36, %69, %70 : vector<8x256xi1>, vector<8x256xf32>
    %72 = tpu.concatenate %62, %65, %68, %71, %59 in 0 : vector<8x256xf32>, vector<8x256xf32>, vector<8x256xf32>, vector<8x256xf32>, vector<8x256xf32> -> vector<40x256xf32>
    %73 = arith.truncf %72 : vector<40x256xf32> to vector<40x256xbf16>
    %c0_31 = arith.constant 0 : index
    %c0_32 = arith.constant 0 : index
    %c0_33 = arith.constant 0 : index
    %74 = vector.load %arg6[%c0_31, %c0_32, %c0_33] : memref<2x8x40xbf16, #tpu.memory_space<vmem>>, vector<1x8x40xbf16>
    %75 = vector.shape_cast %74 : vector<1x8x40xbf16> to vector<8x40xbf16>
    %cst_34 = arith.constant dense<0.000000e+00> : vector<8x256xf32>
    %76 = tpu.matmul %75, %73, %cst_34 {dimension_numbers = #tpu.dot_dimension_numbers<[1], [0], [0], [1], [0, 0, 1, 1], [], []>} : vector<8x40xbf16>, vector<40x256xbf16>, vector<8x256xf32> -> vector<8x256xf32>
    %c0_35 = arith.constant 0 : index
    %c0_36 = arith.constant 0 : index
    %c0_37 = arith.constant 0 : index
    %77 = vector.load %arg7[%c0_35, %c0_36, %c0_37] : memref<2x8x1xf32, #tpu.memory_space<vmem>>, vector<1x8x1xf32>
    %78 = vector.shape_cast %77 : vector<1x8x1xf32> to vector<8x1xf32>
    %79 = vector.broadcast %78 : vector<8x1xf32> to vector<8x256xf32>
    %80 = arith.addf %76, %79 : vector<8x256xf32>
    %c0_38 = arith.constant 0 : index
    %c0_39 = arith.constant 0 : index
    %c0_40 = arith.constant 0 : index
    %81 = vector.load %arg8[%c0_38, %c0_39, %c0_40] : memref<2x16x8xbf16, #tpu.memory_space<vmem>>, vector<1x16x8xbf16>
    %82 = vector.shape_cast %81 : vector<1x16x8xbf16> to vector<16x8xbf16>
    %cst_41 = arith.constant 0.000000e+00 : f32
    %83 = vector.broadcast %cst_41 : f32 to vector<8x256xf32>
    %84 = arith.maximumf %80, %83 : vector<8x256xf32>
    %85 = arith.truncf %84 : vector<8x256xf32> to vector<8x256xbf16>
    %cst_42 = arith.constant dense<0.000000e+00> : vector<16x256xf32>
    %86 = tpu.matmul %82, %85, %cst_42 {dimension_numbers = #tpu.dot_dimension_numbers<[1], [0], [0], [1], [0, 0, 1, 1], [], []>} : vector<16x8xbf16>, vector<8x256xbf16>, vector<16x256xf32> -> vector<16x256xf32>
    %87 = arith.addf %47, %86 : vector<16x256xf32>
    %c0_43 = arith.constant 0 : index
    %c0_44 = arith.constant 0 : index
    %c0_45 = arith.constant 0 : index
    %88 = vector.load %arg9[%c0_43, %c0_44, %c0_45] : memref<2x16x1xf32, #tpu.memory_space<vmem>>, vector<1x16x1xf32>
    %89 = vector.shape_cast %88 : vector<1x16x1xf32> to vector<16x1xf32>
    %90 = vector.broadcast %89 : vector<16x1xf32> to vector<16x256xf32>
    %91 = arith.addf %87, %90 : vector<16x256xf32>
    %c1 = arith.constant 1 : index
    %c0_46 = arith.constant 0 : index
    %c0_47 = arith.constant 0 : index
    %92 = vector.load %arg4[%c1, %c0_46, %c0_47] : memref<2x8x16xbf16, #tpu.memory_space<vmem>>, vector<1x8x16xbf16>
    %93 = vector.shape_cast %92 : vector<1x8x16xbf16> to vector<8x16xbf16>
    %cst_48 = arith.constant 0.000000e+00 : f32
    %94 = vector.broadcast %cst_48 : f32 to vector<16x256xf32>
    %95 = arith.maximumf %91, %94 : vector<16x256xf32>
    %96 = arith.truncf %95 : vector<16x256xf32> to vector<16x256xbf16>
    %cst_49 = arith.constant dense<0.000000e+00> : vector<8x256xf32>
    %97 = tpu.matmul %93, %96, %cst_49 {dimension_numbers = #tpu.dot_dimension_numbers<[1], [0], [0], [1], [0, 0, 1, 1], [], []>} : vector<8x16xbf16>, vector<16x256xbf16>, vector<8x256xf32> -> vector<8x256xf32>
    %c1_50 = arith.constant 1 : index
    %c0_51 = arith.constant 0 : index
    %c0_52 = arith.constant 0 : index
    %98 = vector.load %arg5[%c1_50, %c0_51, %c0_52] : memref<2x8x1xf32, #tpu.memory_space<vmem>>, vector<1x8x1xf32>
    %99 = vector.shape_cast %98 : vector<1x8x1xf32> to vector<8x1xf32>
    %100 = vector.broadcast %99 : vector<8x1xf32> to vector<8x256xf32>
    %101 = arith.addf %97, %100 : vector<8x256xf32>
    %cst_53 = arith.constant 0.000000e+00 : f32
    %102 = vector.broadcast %cst_53 : f32 to vector<8x256xf32>
    %103 = arith.maximumf %101, %102 : vector<8x256xf32>
    %c17_i32_54 = arith.constant 17 : i32
    %104 = tpu.dynamic_rotate %103 by %c17_i32_54 dim 1 : vector<8x256xf32>, i32 -> vector<8x256xf32>
    %cst_55 = arith.constant 0.000000e+00 : f32
    %105 = vector.broadcast %cst_55 : f32 to vector<8x256xf32>
    %106 = arith.select %39, %104, %105 : vector<8x256xi1>, vector<8x256xf32>
    %c16_i32_56 = arith.constant 16 : i32
    %107 = tpu.dynamic_rotate %103 by %c16_i32_56 dim 1 : vector<8x256xf32>, i32 -> vector<8x256xf32>
    %cst_57 = arith.constant 0.000000e+00 : f32
    %108 = vector.broadcast %cst_57 : f32 to vector<8x256xf32>
    %109 = arith.select %34, %107, %108 : vector<8x256xi1>, vector<8x256xf32>
    %c15_i32_58 = arith.constant 15 : i32
    %110 = tpu.dynamic_rotate %103 by %c15_i32_58 dim 1 : vector<8x256xf32>, i32 -> vector<8x256xf32>
    %cst_59 = arith.constant 0.000000e+00 : f32
    %111 = vector.broadcast %cst_59 : f32 to vector<8x256xf32>
    %112 = arith.select %40, %110, %111 : vector<8x256xi1>, vector<8x256xf32>
    %c1_i32_60 = arith.constant 1 : i32
    %113 = tpu.dynamic_rotate %103 by %c1_i32_60 dim 1 : vector<8x256xf32>, i32 -> vector<8x256xf32>
    %cst_61 = arith.constant 0.000000e+00 : f32
    %114 = vector.broadcast %cst_61 : f32 to vector<8x256xf32>
    %115 = arith.select %36, %113, %114 : vector<8x256xi1>, vector<8x256xf32>
    %116 = tpu.concatenate %106, %109, %112, %115, %103 in 0 : vector<8x256xf32>, vector<8x256xf32>, vector<8x256xf32>, vector<8x256xf32>, vector<8x256xf32> -> vector<40x256xf32>
    %117 = arith.truncf %116 : vector<40x256xf32> to vector<40x256xbf16>
    %c1_62 = arith.constant 1 : index
    %c0_63 = arith.constant 0 : index
    %c0_64 = arith.constant 0 : index
    %118 = vector.load %arg6[%c1_62, %c0_63, %c0_64] : memref<2x8x40xbf16, #tpu.memory_space<vmem>>, vector<1x8x40xbf16>
    %119 = vector.shape_cast %118 : vector<1x8x40xbf16> to vector<8x40xbf16>
    %cst_65 = arith.constant dense<0.000000e+00> : vector<8x256xf32>
    %120 = tpu.matmul %119, %117, %cst_65 {dimension_numbers = #tpu.dot_dimension_numbers<[1], [0], [0], [1], [0, 0, 1, 1], [], []>} : vector<8x40xbf16>, vector<40x256xbf16>, vector<8x256xf32> -> vector<8x256xf32>
    %c1_66 = arith.constant 1 : index
    %c0_67 = arith.constant 0 : index
    %c0_68 = arith.constant 0 : index
    %121 = vector.load %arg7[%c1_66, %c0_67, %c0_68] : memref<2x8x1xf32, #tpu.memory_space<vmem>>, vector<1x8x1xf32>
    %122 = vector.shape_cast %121 : vector<1x8x1xf32> to vector<8x1xf32>
    %123 = vector.broadcast %122 : vector<8x1xf32> to vector<8x256xf32>
    %124 = arith.addf %120, %123 : vector<8x256xf32>
    %c1_69 = arith.constant 1 : index
    %c0_70 = arith.constant 0 : index
    %c0_71 = arith.constant 0 : index
    %125 = vector.load %arg8[%c1_69, %c0_70, %c0_71] : memref<2x16x8xbf16, #tpu.memory_space<vmem>>, vector<1x16x8xbf16>
    %126 = vector.shape_cast %125 : vector<1x16x8xbf16> to vector<16x8xbf16>
    %cst_72 = arith.constant 0.000000e+00 : f32
    %127 = vector.broadcast %cst_72 : f32 to vector<8x256xf32>
    %128 = arith.maximumf %124, %127 : vector<8x256xf32>
    %129 = arith.truncf %128 : vector<8x256xf32> to vector<8x256xbf16>
    %cst_73 = arith.constant dense<0.000000e+00> : vector<16x256xf32>
    %130 = tpu.matmul %126, %129, %cst_73 {dimension_numbers = #tpu.dot_dimension_numbers<[1], [0], [0], [1], [0, 0, 1, 1], [], []>} : vector<16x8xbf16>, vector<8x256xbf16>, vector<16x256xf32> -> vector<16x256xf32>
    %131 = arith.addf %91, %130 : vector<16x256xf32>
    %c1_74 = arith.constant 1 : index
    %c0_75 = arith.constant 0 : index
    %c0_76 = arith.constant 0 : index
    %132 = vector.load %arg9[%c1_74, %c0_75, %c0_76] : memref<2x16x1xf32, #tpu.memory_space<vmem>>, vector<1x16x1xf32>
    %133 = vector.shape_cast %132 : vector<1x16x1xf32> to vector<16x1xf32>
    %134 = vector.broadcast %133 : vector<16x1xf32> to vector<16x256xf32>
    %135 = arith.addf %131, %134 : vector<16x256xf32>
    %c0_77 = arith.constant 0 : index
    %c0_78 = arith.constant 0 : index
    %136 = vector.load %arg10[%c0_77, %c0_78] : memref<16x16xbf16, #tpu.memory_space<vmem>>, vector<16x16xbf16>
    %cst_79 = arith.constant 0.000000e+00 : f32
    %137 = vector.broadcast %cst_79 : f32 to vector<16x256xf32>
    %138 = arith.maximumf %135, %137 : vector<16x256xf32>
    %139 = arith.truncf %138 : vector<16x256xf32> to vector<16x256xbf16>
    %cst_80 = arith.constant dense<0.000000e+00> : vector<16x256xf32>
    %140 = tpu.matmul %136, %139, %cst_80 {dimension_numbers = #tpu.dot_dimension_numbers<[1], [0], [0], [1], [0, 0, 1, 1], [], []>} : vector<16x16xbf16>, vector<16x256xbf16>, vector<16x256xf32> -> vector<16x256xf32>
    %c0_81 = arith.constant 0 : index
    %c0_82 = arith.constant 0 : index
    %141 = vector.load %arg11[%c0_81, %c0_82] : memref<16x1xf32, #tpu.memory_space<vmem>>, vector<16x1xf32>
    %142 = vector.broadcast %141 : vector<16x1xf32> to vector<16x256xf32>
    %143 = arith.addf %140, %142 : vector<16x256xf32>
    %cst_83 = arith.constant 0.000000e+00 : f32
    %144 = vector.broadcast %cst_83 : f32 to vector<16x256xf32>
    %145 = arith.maximumf %143, %144 : vector<16x256xf32>
    %c0_84 = arith.constant 0 : index
    %c0_85 = arith.constant 0 : index
    %146 = vector.load %arg12[%c0_84, %c0_85] : memref<256x16xbf16, #tpu.memory_space<vmem>>, vector<256x16xbf16>
    %147 = arith.truncf %145 : vector<16x256xf32> to vector<16x256xbf16>
    %cst_86 = arith.constant dense<0.000000e+00> : vector<256x256xf32>
    %148 = tpu.matmul %146, %147, %cst_86 {dimension_numbers = #tpu.dot_dimension_numbers<[1], [0], [0], [1], [0, 0, 1, 1], [], []>} : vector<256x16xbf16>, vector<16x256xbf16>, vector<256x256xf32> -> vector<256x256xf32>
    %c0_87 = arith.constant 0 : index
    %c0_88 = arith.constant 0 : index
    %149 = vector.load %arg13[%c0_87, %c0_88] : memref<256x1xf32, #tpu.memory_space<vmem>>, vector<256x1xf32>
    %150 = vector.broadcast %149 : vector<256x1xf32> to vector<256x256xf32>
    %151 = arith.addf %148, %150 : vector<256x256xf32>
    %c0_89 = arith.constant 0 : index
    %c0_90 = arith.constant 0 : index
    %152 = vector.load %arg14[%c0_89, %c0_90] : memref<256x256xf32, #tpu.memory_space<vmem>>, vector<256x256xf32>
    tpu.vector_store %arg14[%c0_89, %c0_90], %151 {strides = array<i32>} : memref<256x256xf32, #tpu.memory_space<vmem>>, vector<256x256xf32>,
    %cst_91 = arith.constant dense<0xFF800000> : vector<256xf32>
    %153 = vector.multi_reduction <maximumf>, %151, %cst_91 [0] : vector<256x256xf32> to vector<256xf32>
    %154 = vector.shape_cast %153 : vector<256xf32> to vector<1x256xf32>
    %155 = vector.broadcast %154 : vector<1x256xf32> to vector<256x256xf32>
    %156 = arith.subf %151, %155 : vector<256x256xf32>
    %157 = math.exp %156 : vector<256x256xf32>
    %cst_92 = arith.constant dense<0.000000e+00> : vector<256xf32>
    %158 = vector.multi_reduction <add>, %157, %cst_92 [0] : vector<256x256xf32> to vector<256xf32>
    %159 = vector.shape_cast %158 : vector<256xf32> to vector<1x256xf32>
    %160 = tpu.reciprocal %159 {approx = true} : vector<1x256xf32> -> vector<1x256xf32>
    %161 = arith.mulf %159, %160 : vector<1x256xf32>
    %cst_93 = arith.constant 2.000000e+00 : f32
    %162 = vector.broadcast %cst_93 : f32 to vector<1x256xf32>
    %163 = arith.subf %162, %161 : vector<1x256xf32>
    %164 = arith.mulf %160, %163 : vector<1x256xf32>
    %165 = vector.broadcast %164 : vector<1x256xf32> to vector<256x256xf32>
    %166 = arith.mulf %157, %165 : vector<256x256xf32>
    %c0_94 = arith.constant 0 : index
    %c0_95 = arith.constant 0 : index
    %167 = vector.load %arg15[%c0_94, %c0_95] : memref<256x256xf32, #tpu.memory_space<vmem>>, vector<256x256xf32>
    tpu.vector_store %arg15[%c0_94, %c0_95], %166 {strides = array<i32>} : memref<256x256xf32, #tpu.memory_space<vmem>>, vector<256x256xf32>,
    return
  }
  func.func @transform_0(%arg0: i32) -> (i32, i32) {
    %c0_i32 = arith.constant 0 : i32
    %c0_i32_0 = arith.constant 0 : i32
    return %c0_i32, %arg0 : i32, i32
  }
  func.func @transform_1(%arg0: i32) -> (i32, i32) {
    %c0_i32 = arith.constant 0 : i32
    %c0_i32_0 = arith.constant 0 : i32
    %c0_i32_1 = arith.constant 0 : i32
    return %c0_i32, %c0_i32_0 : i32, i32
  }
  func.func @transform_2(%arg0: i32) -> (i32, i32) {
    %c0_i32 = arith.constant 0 : i32
    %c0_i32_0 = arith.constant 0 : i32
    %c0_i32_1 = arith.constant 0 : i32
    return %c0_i32, %c0_i32_0 : i32, i32
  }
  func.func @transform_3(%arg0: i32) -> (i32, i32, i32) {
    %c0_i32 = arith.constant 0 : i32
    %c0_i32_0 = arith.constant 0 : i32
    %c0_i32_1 = arith.constant 0 : i32
    %c0_i32_2 = arith.constant 0 : i32
    return %c0_i32, %c0_i32_0, %c0_i32_1 : i32, i32, i32
  }
  func.func @transform_4(%arg0: i32) -> (i32, i32, i32) {
    %c0_i32 = arith.constant 0 : i32
    %c0_i32_0 = arith.constant 0 : i32
    %c0_i32_1 = arith.constant 0 : i32
    %c0_i32_2 = arith.constant 0 : i32
    return %c0_i32, %c0_i32_0, %c0_i32_1 : i32, i32, i32
  }
  func.func @transform_5(%arg0: i32) -> (i32, i32, i32) {
    %c0_i32 = arith.constant 0 : i32
    %c0_i32_0 = arith.constant 0 : i32
    %c0_i32_1 = arith.constant 0 : i32
    %c0_i32_2 = arith.constant 0 : i32
    return %c0_i32, %c0_i32_0, %c0_i32_1 : i32, i32, i32
  }
  func.func @transform_6(%arg0: i32) -> (i32, i32, i32) {
    %c0_i32 = arith.constant 0 : i32
    %c0_i32_0 = arith.constant 0 : i32
    %c0_i32_1 = arith.constant 0 : i32
    %c0_i32_2 = arith.constant 0 : i32
    return %c0_i32, %c0_i32_0, %c0_i32_1 : i32, i32, i32
  }
  func.func @transform_7(%arg0: i32) -> (i32, i32, i32) {
    %c0_i32 = arith.constant 0 : i32
    %c0_i32_0 = arith.constant 0 : i32
    %c0_i32_1 = arith.constant 0 : i32
    %c0_i32_2 = arith.constant 0 : i32
    return %c0_i32, %c0_i32_0, %c0_i32_1 : i32, i32, i32
  }
  func.func @transform_8(%arg0: i32) -> (i32, i32, i32) {
    %c0_i32 = arith.constant 0 : i32
    %c0_i32_0 = arith.constant 0 : i32
    %c0_i32_1 = arith.constant 0 : i32
    %c0_i32_2 = arith.constant 0 : i32
    return %c0_i32, %c0_i32_0, %c0_i32_1 : i32, i32, i32
  }
  func.func @transform_9(%arg0: i32) -> (i32, i32) {
    %c0_i32 = arith.constant 0 : i32
    %c0_i32_0 = arith.constant 0 : i32
    %c0_i32_1 = arith.constant 0 : i32
    return %c0_i32, %c0_i32_0 : i32, i32
  }
  func.func @transform_10(%arg0: i32) -> (i32, i32) {
    %c0_i32 = arith.constant 0 : i32
    %c0_i32_0 = arith.constant 0 : i32
    %c0_i32_1 = arith.constant 0 : i32
    return %c0_i32, %c0_i32_0 : i32, i32
  }
  func.func @transform_11(%arg0: i32) -> (i32, i32) {
    %c0_i32 = arith.constant 0 : i32
    %c0_i32_0 = arith.constant 0 : i32
    %c0_i32_1 = arith.constant 0 : i32
    return %c0_i32, %c0_i32_0 : i32, i32
  }
  func.func @transform_12(%arg0: i32) -> (i32, i32) {
    %c0_i32 = arith.constant 0 : i32
    %c0_i32_0 = arith.constant 0 : i32
    %c0_i32_1 = arith.constant 0 : i32
    return %c0_i32, %c0_i32_0 : i32, i32
  }
  func.func @transform_13(%arg0: i32) -> (i32, i32) {
    %c0_i32 = arith.constant 0 : i32
    %c0_i32_0 = arith.constant 0 : i32
    return %c0_i32, %arg0 : i32, i32
  }
  func.func @transform_14(%arg0: i32) -> (i32, i32) {
    %c0_i32 = arith.constant 0 : i32
    %c0_i32_0 = arith.constant 0 : i32
    return %c0_i32, %arg0 : i32, i32
  }
}

</mosaic_0001>

<bundles_post_ra>
// kernel: pixelcnn_forward.1
= control target key start
LH: loop header
LB: loop body
LE: loop exit
PB: predicated region body
PF: predicated region fallthrough
CT: control target
= control target key end

     0   :  { %s3120_s29 = smov 0   ;;  %s3122_s30 = smov 0   ;;  %s4807_s0 = inlined_call_operand.vmem [shape: f32[24,512], index: 0, kind: input, shape index: {}]   ;;  %s4808_s1 = inlined_call_operand.vmem [shape: bf16[16,24], index: 1, kind: input, shape index: {}]   ;;  %s4809_s2 = inlined_call_operand.vmem [shape: f32[16,1], index: 2, kind: input, shape index: {}]   ;;  %s4810_s3 = inlined_call_operand.vmem [shape: bf16[2,8,16], index: 3, kind: input, shape index: {}]   ;;  %s4811_s4 = inlined_call_operand.vmem [shape: f32[2,8,1], index: 4, kind: input, shape index: {}]   ;;  %s4812_s5 = inlined_call_operand.vmem [shape: bf16[2,8,40], index: 5, kind: input, shape index: {}]   ;;  %s4813_s6 = inlined_call_operand.vmem [shape: f32[2,8,1], index: 6, kind: input, shape index: {}]   ;;  %s4814_s7 = inlined_call_operand.vmem [shape: bf16[2,16,8], index: 7, kind: input, shape index: {}]   ;;  %s4815_s8 = inlined_call_operand.vmem [shape: f32[2,16,1], index: 8, kind: input, shape index: {}]   ;;  %s4816_s9 = inlined_call_operand.vmem [shape: bf16[16,16], index: 9, kind: input, shape index: {}]   ;;  %s4817_s10 = inlined_call_operand.vmem [shape: f32[16,1], index: 10, kind: input, shape index: {}]   ;;  %s4818_s11 = inlined_call_operand.vmem [shape: bf16[256,16], index: 11, kind: input, shape index: {}]   ;;  %s4819_s12 = inlined_call_operand.vmem [shape: f32[256,1], index: 12, kind: input, shape index: {}]   ;;  %s4820_s13 = inlined_call_operand.vmem [shape: f32[256,512], index: 13, kind: output, shape index: {0}]   ;;  %s4821_s14 = inlined_call_operand.vmem [shape: f32[256,512], index: 14, kind: output, shape index: {1}]  }
   0x1   :  { %s3124_s15 = smov 0  }
   0x2 LB: > { %s3136_s16 = sadd.s32 4294967295, %s3037_s15   ;;  %s3139_s17 = sadd.s32 1, %s3037_s15   ;;  %s3037_s15 = sphi %s3124_s15, %s4952_s15   ;;  %s3033_s30 = sphi %s3122_s30, %s4951_s30   ;;  %s3029_s29 = sphi %s3120_s29, %s4950_s29  }
   0x3   : > { %s29_s18 = ssub.s32 %s3037_s15, %s3139_s17  ;;  %s32_s19 = sadd.s32 1, %s3033_s30 }
   0x4   : > { %p30_p0 = scmp.eq.s32.totalorder %s29_s18, 0  ;;  %p39_p1 = scmp.ne.s32.totalorder %s3033_s30, %s3029_s29 }
   0x5   : > { %p40_p2 = scmp.eq.s32.totalorder %s3037_s15, 0  ;;  %p321_p3 = scmp.eq.s32.totalorder %s3136_s16, 1 }
   0x6   : > { %s3149_s20 = scalar_select %p30_p0, %s3033_s30, %s32_s19  }
   0x7   : > { %p41_p4 = por %p40_p2, %p39_p1  ;;  %p3151_p5 = por %p321_p3, %p39_p1 }
   0x8   : > { %p2689_p6 = scmp.ge.s32.totalorder %s3037_s15, 2 }
   0xa   : > { %405 = sbr.rel (%p2689_p6) target bundleno = 24 (0x18), region = 64 }
  0x11   : > { %408 = sbr.rel (!%p41_p4) target bundleno = 24 (0x18), region = 68  ;;  %s410_s22 = sand.u32 (%p41_p4), 1, %s3033_s30  }
  0x12   : > { %s2784_s23 = sshll.u32 (%p41_p4), %s3037_s15, 4  ;;  %s2789_s24 = smul.u32 (%p41_p4), 48, %s410_s22 }
  0x13   : > { %s415_s27 = scalar_lea.vmem (%p41_p4), %s4807_s0, %s2784_s23 }
  0x14   : > { %v428_v0 = vld [vmem:[%s415_s27] sm:$0xff] (%p41_p4)  ;;  %v430_v1 = vld [vmem:[%s415_s27 + $0x8] sm:$0xff] (%p41_p4)  ;;  %s412_s28 = scalar_lea.vmem (%p41_p4), [#allocation2], %s2789_s24 }
  0x15   : > { %v432_v2 = vld [vmem:[%s415_s27 + $0x20] sm:$0xff] (%p41_p4)  ;;  %v434_v3 = vld [vmem:[%s415_s27 + $0x28] sm:$0xff] (%p41_p4)  ;;  %429 = vst [vmem:[%s412_s28] sm:$0xff] (%p41_p4), %v428_v0  ;;  %431 = vst [vmem:[%s412_s28 + $0x8] sm:$0xff] (%p41_p4), %v430_v1 }
  0x16   : > { %v436_v4 = vld [vmem:[%s415_s27 + $0x40] sm:$0xff] (%p41_p4)  ;;  %v438_v5 = vld [vmem:[%s415_s27 + $0x48] sm:$0xff] (%p41_p4)  ;;  %433 = vst [vmem:[%s412_s28 + $0x10] sm:$0xff] (%p41_p4), %v432_v2  ;;  %435 = vst [vmem:[%s412_s28 + $0x18] sm:$0xff] (%p41_p4), %v434_v3 }
  0x17   : > { %437 = vst [vmem:[%s412_s28 + $0x20] sm:$0xff] (%p41_p4), %v436_v4  ;;  %439 = vst [vmem:[%s412_s28 + $0x28] sm:$0xff] (%p41_p4), %v438_v5 }
  0x18 PF: > { %p2692_p7 = scmp.ge.s32.totalorder %s3037_s15, 1  ;;  %p444_p8 = scmp.lt.s32.totalorder %s3037_s15, 3 }
  0x1a   : > { %p445_p9 = pnand %p2692_p7, %p444_p8 }
  0x1c   : > { %448 = sbr.rel (%p445_p9) target bundleno = 2625 (0xa41), region = 91 }
  0x23   : > { %s4822_s18 = sand.u32 1, %s3029_s29   ;;  %v3039_v6 = vmov 0   ;;  %v576_v7 = vld [vmem:[%s4809_s2] sm:$0xff]  ;;  %v577_v8 = vld [vmem:[%s4809_s2 + $0x8] sm:$0xff]  ;;  %vm597_vm0 = vcmask 1043456   ;;  %vm593_vm1 = vcmask 195584   ;;  %v503_v53 = vlaneseq }
  0x24   : > { %s2790_s19 = smul.u32 48, %s4822_s18  ;;  %636 = vmatprep.mubr.bf16.mxu0 %v3039_v6  ;;  %2821 = vset.pattern.permute.xlu0 %v3039_v6  ;;  %v2863_v20 = vld [vmem:[%s4808_s1] sm:$0xff]   ;;  %vm660_vm2 = vcmask 130048   ;;  %s4824_s15 = smov 16   ;;  %v2717_v51 = vld [vmem:[%s4811_s4 + $0x8] sm:$0xff]  ;;  %vm3044_vm11 = vmmov 1  }
  0x25   : > { %580 = vperm.xlu0 %2821, %v576_v7   ;;  %696 = vmatprep.mubr.bf16.mxu1 %v3039_v6  ;;  %v654_v21 = vld [vmem:[%s4811_s4] sm:$0xff]  ;;  %s4823_s24 = smov 17   ;;  %s3043_s26 = smov 15   ;;  %v876_v52 = vld [vmem:[%s4815_s8 + $0x8] sm:$0xff]  ;;  %v3224_v54 = vand.u32 127, %v503_v53 }
  0x26   : > { %2822 = vset.pattern.permute.xlu1 %v3039_v6  ;;  %s453_s25 = scalar_lea.vmem [#allocation2], %s2790_s19  ;;  %v647_v38 = vld [vmem:[%s4810_s3] sm:$0xf]  ;;  %s4873_s22 = smov 16   ;;  %v2719_v63 = vld [vmem:[%s4812_s5 + $0x4] sm:$0xf] }
  0x27   : > { %v567_v9 = vld [vmem:[%s453_s25 + $0x8] sm:$0xff]  ;;  %v569_v10 = vld [vmem:[%s453_s25 + $0x18] sm:$0xff]  ;;  %v566_v11 = vld [vmem:[%s453_s25] sm:$0xff]  ;;  %657 = vperm.xlu1 %2822, %v654_v21   ;;  %v505_v55 = vadd.s32 128, %v3224_v54  ;;  %v510_v56 = vand.u32 15, %v3224_v54  ;;  %v534_v57 = vand.u32 255, %v3224_v54 }
  0x28   : > { %v573_v12 = vpack.c.bf16 %v569_v10, %v567_v9  ;;  %v568_v13 = vld [vmem:[%s453_s25 + $0x10] sm:$0xff]  ;;  %v571_v14 = vld [vmem:[%s453_s25 + $0x28] sm:$0xff]  ;;  %v570_v15 = vld [vmem:[%s453_s25 + $0x20] sm:$0xff]  ;;  %s3042_s25 = smov 1   ;;  %vm720_vm5 = vcmp.lt.s32.totalorder %v3224_v54, 16  ;;  %vm711_vm6 = vcmp.lt.s32.totalorder %v3224_v54, 17 }
  0x29   : > { %v572_v16 = vpack.c.bf16 %v568_v13, %v566_v11  ;;  %v575_v17 = vpack.c.bf16 %v571_v14, %v571_v14  ;;  %v574_v18 = vpack.c.bf16 %v570_v15, %v570_v15  ;;  %585 = vperm.xlu0 %2821, %v577_v8   ;;  %v875_v49 = vld [vmem:[%s4815_s8] sm:$0xff]  ;;  %v517_v58 = vand.u32 15, %v505_v55  ;;  %s4874_s23 = smov 17   ;;  %s2785_s19 = sshll.u32 (%p3151_p5), %s3136_s16, 4 }
  0x2a   : > { %604 = vmatprep.subr.bf16.mxu0 %v573_v12  ;;  %v750_v50 = vld [vmem:[%s4813_s6] sm:$0xff]  ;;  %vm3229_vm3 = vcmp.ge.s32.totalorder %v534_v57, 16  ;;  %vm3233_vm4 = vcmp.ne.s32.totalorder %v510_v56, 0  ;;  %vm738_vm9 = vcmp.lt.s32.totalorder %v3224_v54, 1  ;;  %vm3248_vm10 = vcmp.ne.s32.totalorder %v510_v56, 15 }
  0x2b   : > { %605 = vmatpush1.bf16.msra.mxu0 %v572_v16  ;;  %v599_v19 = vsel %vm597_vm0, %v574_v18, 0  ;;  %vm3239_vm7 = vcmp.ne.s32.totalorder %v517_v58, 0  ;;  %vm560_vm8 = vmand %vm3229_vm3, %vm3233_vm4  ;;  %vm729_vm13 = vcmp.lt.s32.totalorder %v3224_v54, 15  ;;  %vm3273_vm15 = vcmp.ne.s32.totalorder %v517_v58, 15 }
  0x2c   : > { %2696 = vmatprep.subr.msk.bf16.mxu0 %vm597_vm0, %v575_v17  ;;  %vm3262_vm12 = vmpackc.low %vm3044_vm11, %vm3239_vm7 }
  0x2d   : > { %vm3269_vm14 = vmpackc.low %vm3229_vm3, %vm560_vm8 }
  0x2f   : > { %607 = vmatpush1.bf16.msra.mxu0 %v599_v19 }
  0x32   : > { %2697 = vmatmul.mubr.msk.bf16.vlgmr.msra.gmra.mrb[0].mxu0 %vm593_vm1, %v2863_v20  ;;  %vm562_vm1 = vmand %vm3229_vm3, %vm3248_vm10  ;;  %vm818_vm10 = vcmask 64512  }
  0x33   : > { %941 = vmatprep.mubr.bf16.mxu0 %v3039_v6  ;;  %vm2705_vm3 = vmpackc.low %vm3239_vm7, %vm3273_vm15 }
  0x34   : > { %vm3299_vm8 = vmpackc.low %vm3233_vm4, %vm562_vm1  ;;  %vm756_vm4 = vcmask 326656  }
  0xa4   : > { %v581_v22 = vpop.permute.xlu0 %580 }
  0xa6   : > { %v658_v39 = vpop.permute.xlu1 %657 }
  0xa8   : > { %v586_v25 = vpop.permute.xlu0 %585 }
 0x105   : > { %v638_v23 = vpop.f32.mrb[0].mxu0 }
 0x106   : > { %v640_v24 = vpop.f32.mrb[1].mxu0  ;;  %v3187_v28 = vadd.f32 %v638_v23, %v581_v22 }
 0x107   : > { %v3185_v26 = vadd.f32 %v640_v24, %v581_v22  ;;  %v642_v27 = vpop.f32.mrb[2].mxu0 }
 0x108   : > { %v3189_v29 = vadd.f32 %v642_v27, %v586_v25  ;;  %v644_v30 = vpop.f32.mrb[3].mxu0  ;;  %v648_v35 = vmax.f32 %v3187_v28, 0.0 }
 0x109   : > { %v3191_v31 = vadd.f32 %v644_v30, %v586_v25  ;;  %v649_v33 = vmax.f32 %v3185_v26, 0.0 }
 0x10a   : > { %v650_v32 = vmax.f32 %v3189_v29, 0.0 }
 0x10b   : > { %v651_v34 = vmax.f32 %v3191_v31, 0.0 }
 0x10c   : > { %v652_v37 = vpack.c.bf16 %v650_v32, %v648_v35  ;;  %v749_v35 = vld [vmem:[%s4812_s5] sm:$0xf] }
 0x10d   : > { %v653_v36 = vpack.c.bf16 %v651_v34, %v649_v33 }
 0x10f   : > { %664 = vmatprep.subr.bf16.mxu1 %v653_v36 }
 0x110   : > { %665 = vmatpush1.bf16.msra.mxu1 %v652_v37 }
 0x113   : > { %2698 = vmatmul.mubr.msk.bf16.vlgmr.msra.gmra.mrb[0].mxu1 %vm660_vm2, %v647_v38 }
 0x114   : > { %798 = vmatprep.mubr.bf16.mxu1 %v3039_v6 }
 0x1e6   : > { %v698_v40 = vpop.f32.mrb[0].mxu1 }
 0x1e7   : > { %v699_v41 = vadd.f32 %v698_v40, %v658_v39  ;;  %v700_v42 = vpop.f32.mrb[1].mxu1 }
 0x1e8   : > { %v701_v43 = vadd.f32 %v700_v42, %v658_v39  ;;  %v702_v44 = vpop.f32.mrb[2].mxu1 }
 0x1e9   : > { %v3202_v45 = vmax.f32 %v699_v41, 0.0  ;;  %v703_v46 = vpop.f32.mrb[3].mxu1 }
 0x1ea   : > { %v3204_v47 = vmax.f32 %v701_v43, 0.0 }
 0x1eb   : > { %v747_v33 = vpack.c.bf16 %v3202_v45, %v3202_v45 }
 0x1ec   : > { %v2828_v48 = vpack.i.bf16 %v3204_v47, %v3202_v45  ;;  %v748_v32 = vpack.c.bf16 %v3204_v47, %v3204_v47 }
 0x1ed   : > { %v761_v34 = vsel %vm597_vm0, %v747_v33, 0  ;;  %v1249_v33 = vld [vmem:[%s4819_s12 + $0x30] sm:$0xff] }
 0x1ee   : > { %2829 = vrot.lane.b32.xlu0 %v2828_v48, %s4824_s15  ;;  %2824 = vrot.lane.b32.xlu1 %v2828_v48, %s4823_s24  ;;  %s4875_s24 = sand.u32 1, %s3029_s29  }
 0x1ef   : > { %s3634_s27 = sshll.u32 %s4875_s24, 9 }
 0x1f0   : > { %s3645_s29 = scalar_lea.vmem [#allocation3], %s3634_s27  ;;  %s4403_s28 = scalar_lea.vmem [#allocation4], %s3634_s27 }
 0x1f2   : > { %2839 = vrot.lane.b32.xlu0 %v2828_v48, %s3042_s25  ;;  %2834 = vrot.lane.b32.xlu1 %v2828_v48, %s3043_s26  ;;  %v2864_v48 = vld [vmem:[%s4814_s7] sm:$0xff]  }
 0x1f6   : > { %879 = vperm.xlu0 %2821, %v875_v49   ;;  %753 = vperm.xlu1 %2822, %v750_v50  }
 0x1fa   : > { %903 = vperm.xlu0 %2821, %v2717_v51   ;;  %884 = vperm.xlu1 %2822, %v876_v52  }
 0x260   : > { %v2830_v61 = vpop.permute.xlu0 %2829  ;;  %v2825_v62 = vpop.permute.xlu1 %2824 }
 0x261   : > { %v2832_v0 = vunpack.i.h.bf16 %v2830_v61  ;;  %v2831_v1 = vunpack.i.l.bf16 %v2830_v61  ;;  %v2827_v2 = vunpack.i.h.bf16 %v2825_v62  ;;  %v2826_v3 = vunpack.i.l.bf16 %v2825_v62 }
 0x263   : > { %v721_v5 = vsel %vm720_vm5, %v2831_v1, %v2832_v0  ;;  %v722_v7 = vsel %vm720_vm5, %v2832_v0, %v2831_v1  ;;  %v712_v8 = vsel %vm711_vm6, %v2826_v3, %v2827_v2  ;;  %v713_v9 = vsel %vm711_vm6, %v2827_v2, %v2826_v3 }
 0x264   : > { %v2700_v11 = vpack.c.bf16 %v721_v5, %v712_v8  ;;  %v2703_v12 = vpack.c.bf16 %v722_v7, %v713_v9  ;;  %v2840_v13 = vpop.permute.xlu0 %2839  ;;  %v2835_v14 = vpop.permute.xlu1 %2834 }
 0x265   : > { %v2842_v17 = vunpack.i.h.bf16 %v2840_v13  ;;  %v2841_v18 = vunpack.i.l.bf16 %v2840_v13  ;;  %v2837_v19 = vunpack.i.h.bf16 %v2835_v14  ;;  %v2836_v20 = vunpack.i.l.bf16 %v2835_v14 }
 0x266   : > { %2701 = vmatprep.subr.msk.bf16.mxu1 %vm3262_vm12, %v2700_v11 }
 0x267   : > { %v739_v21 = vsel %vm738_vm9, %v2841_v18, %v2842_v17  ;;  %v740_v22 = vsel %vm738_vm9, %v2842_v17, %v2841_v18  ;;  %v730_v23 = vsel %vm729_vm13, %v2836_v20, %v2837_v19  ;;  %v731_v24 = vsel %vm729_vm13, %v2837_v19, %v2836_v20  ;;  %2704 = vmatpush1.bf16.msk.msra.mxu1 %vm3269_vm14, %v2703_v12  ;;  %v2740_v18 = vld [vmem:[%s4815_s8 + $0x10] sm:$0xff]  ;;  %v2720_v19 = vld [vmem:[%s4813_s6 + $0x8] sm:$0xff]  ;;  %v1142_v20 = vld [vmem:[%s4817_s10] sm:$0xff] }
 0x268   : > { %v2706_v25 = vpack.c.bf16 %v739_v21, %v730_v23  ;;  %v2709_v27 = vpack.c.bf16 %v740_v22, %v731_v24  ;;  %v2741_v21 = vld [vmem:[%s4815_s8 + $0x18] sm:$0xff]  ;;  %v1243_v22 = vld [vmem:[%s4819_s12] sm:$0xff]  ;;  %v1143_v23 = vld [vmem:[%s4817_s10 + $0x8] sm:$0xff] }
 0x269   : > { %v1245_v24 = vld [vmem:[%s4819_s12 + $0x10] sm:$0xff] }
 0x26a   : > { %2707 = vmatprep.subr.msk.bf16.mxu1 %vm2705_vm3, %v2706_v25  ;;  %v1244_v25 = vld [vmem:[%s4819_s12 + $0x8] sm:$0xff] }
 0x26b   : > { %2710 = vmatpush1.bf16.msk.msra.mxu1 %vm3299_vm8, %v2709_v27  ;;  %v1247_v27 = vld [vmem:[%s4819_s12 + $0x20] sm:$0xff] }
 0x26c   : > { %2711 = vmatprep.subr.msk.bf16.mxu1 %vm597_vm0, %v748_v32  ;;  %v1246_v32 = vld [vmem:[%s4819_s12 + $0x18] sm:$0xff] }
 0x26f   : > { %771 = vmatpush1.bf16.msra.mxu1 %v761_v34  ;;  %v1248_v34 = vld [vmem:[%s4819_s12 + $0x28] sm:$0xff] }
 0x272   : > { %2712 = vmatmul.mubr.msk.bf16.vlgmr.msra.gmra.mrb[4].mxu1 %vm756_vm4, %v749_v35  ;;  %v1251_v35 = vld [vmem:[%s4819_s12 + $0x40] sm:$0xff] }
 0x273   : > { %860 = vmatprep.mubr.bf16.mxu1 %v3039_v6 }
 0x275   : > { %v754_v36 = vpop.permute.xlu1 %753  ;;  %v880_v55 = vpop.permute.xlu0 %879 }
 0x279   : > { %v885_v58 = vpop.permute.xlu1 %884  ;;  %v904_v4 = vpop.permute.xlu0 %903 }
 0x345   : > { %v800_v37 = vpop.f32.mrb[4].mxu1 }
 0x346   : > { %v801_v38 = vadd.f32 %v800_v37, %v754_v36  ;;  %v802_v39 = vpop.f32.mrb[5].mxu1  ;;  %v1253_v37 = vld [vmem:[%s4819_s12 + $0x50] sm:$0xff] }
 0x347   : > { %v803_v40 = vadd.f32 %v802_v39, %v754_v36  ;;  %v804_v41 = vpop.f32.mrb[6].mxu1  ;;  %v1250_v36 = vld [vmem:[%s4819_s12 + $0x38] sm:$0xff]  ;;  %v1255_v39 = vld [vmem:[%s4819_s12 + $0x60] sm:$0xff] }
 0x348   : > { %v809_v42 = vmax.f32 %v801_v38, 0.0  ;;  %v805_v43 = vpop.f32.mrb[7].mxu1  ;;  %v1252_v38 = vld [vmem:[%s4819_s12 + $0x48] sm:$0xff]  ;;  %v1257_v41 = vld [vmem:[%s4819_s12 + $0x70] sm:$0xff] }
 0x349   : > { %v810_v44 = vmax.f32 %v803_v40, 0.0  ;;  %v1254_v40 = vld [vmem:[%s4819_s12 + $0x58] sm:$0xff]  ;;  %v1259_v43 = vld [vmem:[%s4819_s12 + $0x80] sm:$0xff] }
 0x34a   : > { %v811_v45 = vpack.c.bf16 %v809_v42, %v809_v42  ;;  %v1256_v42 = vld [vmem:[%s4819_s12 + $0x68] sm:$0xff] }
 0x34b   : > { %v812_v46 = vpack.c.bf16 %v810_v44, %v810_v44  ;;  %v1258_v44 = vld [vmem:[%s4819_s12 + $0x78] sm:$0xff] }
 0x34c   : > { %v823_v47 = vsel %vm597_vm0, %v811_v45, 0  ;;  %v1261_v45 = vld [vmem:[%s4819_s12 + $0x90] sm:$0xff] }
 0x34d   : > { %2714 = vmatprep.subr.msk.bf16.mxu1 %vm597_vm0, %v812_v46  ;;  %v1260_v46 = vld [vmem:[%s4819_s12 + $0x88] sm:$0xff] }
 0x34e   : > { %829 = vmatpush1.bf16.msra.mxu1 %v823_v47  ;;  %v1263_v47 = vld [vmem:[%s4819_s12 + $0xa0] sm:$0xff] }
 0x351   : > { %2715 = vmatmul.mubr.msk.bf16.vlgmr.msra.gmra.mrb[8].mxu1 %vm818_vm10, %v2864_v48  ;;  %v1262_v48 = vld [vmem:[%s4819_s12 + $0x98] sm:$0xff] }
 0x352   : > { %1040 = vmatprep.mubr.bf16.mxu1 %v3039_v6 }
 0x424   : > { %v862_v49 = vpop.f32.mrb[8].mxu1 }
 0x425   : > { %v871_v50 = vadd.f32 %v862_v49, %v3187_v28  ;;  %v864_v51 = vpop.f32.mrb[9].mxu1  ;;  %v1265_v49 = vld [vmem:[%s4819_s12 + $0xb0] sm:$0xff] }
 0x426   : > { %v872_v52 = vadd.f32 %v864_v51, %v3185_v26  ;;  %v866_v53 = vpop.f32.mrb[10].mxu1  ;;  %v1267_v51 = vld [vmem:[%s4819_s12 + $0xc0] sm:$0xff] }
 0x427   : > { %v873_v56 = vadd.f32 %v866_v53, %v3189_v29  ;;  %v868_v57 = vpop.f32.mrb[11].mxu1  ;;  %v3334_v61 = vadd.f32 %v880_v55, %v871_v50  ;;  %v1264_v50 = vld [vmem:[%s4819_s12 + $0xa8] sm:$0xff]  ;;  %v1269_v53 = vld [vmem:[%s4819_s12 + $0xd0] sm:$0xff] }
 0x428   : > { %v3331_v59 = vadd.f32 %v880_v55, %v872_v52  ;;  %v874_v60 = vadd.f32 %v868_v57, %v3191_v31  ;;  %v2716_v31 = vld [vmem:[%s4810_s3 + $0x4] sm:$0xf]  ;;  %v1266_v52 = vld [vmem:[%s4819_s12 + $0xb8] sm:$0xff]  ;;  %v1268_v55 = vld [vmem:[%s4819_s12 + $0xc8] sm:$0xff] }
 0x429   : > { %v3336_v62 = vadd.f32 %v885_v58, %v873_v56  ;;  %v893_v29 = vmax.f32 %v3334_v61, 0.0  ;;  %v1271_v56 = vld [vmem:[%s4819_s12 + $0xe0] sm:$0xff]  ;;  %v1270_v57 = vld [vmem:[%s4819_s12 + $0xd8] sm:$0xff] }
 0x42a   : > { %v3338_v0 = vadd.f32 %v885_v58, %v874_v60  ;;  %v894_v26 = vmax.f32 %v3331_v59, 0.0  ;;  %v1273_v58 = vld [vmem:[%s4819_s12 + $0xf0] sm:$0xff]  ;;  %v1272_v60 = vld [vmem:[%s4819_s12 + $0xe8] sm:$0xff] }
 0x42b   : > { %v895_v28 = vmax.f32 %v3336_v62, 0.0 }
 0x42c   : > { %v896_v1 = vmax.f32 %v3338_v0, 0.0 }
 0x42d   : > { %v897_v3 = vpack.c.bf16 %v895_v28, %v893_v29  ;;  %v1274_v28 = vld [vmem:[%s4819_s12 + $0xf8] sm:$0xff] }
 0x42e   : > { %v898_v2 = vpack.c.bf16 %v896_v1, %v894_v26 }
 0x430   : > { %909 = vmatprep.subr.bf16.mxu0 %v898_v2 }
 0x431   : > { %910 = vmatpush1.bf16.msra.mxu0 %v897_v3 }
 0x434   : > { %2718 = vmatmul.mubr.msk.bf16.vlgmr.msra.gmra.mrb[4].mxu0 %vm660_vm2, %v2716_v31 }
 0x435   : > { %1102 = vmatprep.mubr.bf16.mxu0 %v3039_v6 }
 0x507   : > { %v943_v5 = vpop.f32.mrb[4].mxu0 }
 0x508   : > { %v944_v7 = vadd.f32 %v943_v5, %v904_v4  ;;  %v945_v8 = vpop.f32.mrb[5].mxu0 }
 0x509   : > { %v946_v9 = vadd.f32 %v945_v8, %v904_v4  ;;  %v947_v11 = vpop.f32.mrb[6].mxu0 }
 0x50a   : > { %v3349_v12 = vmax.f32 %v944_v7, 0.0  ;;  %v948_v13 = vpop.f32.mrb[7].mxu0 }
 0x50b   : > { %v3351_v14 = vmax.f32 %v946_v9, 0.0 }
 0x50d   : > { %v2848_v17 = vpack.i.bf16 %v3351_v14, %v3349_v12  ;;  %v989_v10 = vpack.c.bf16 %v3351_v14, %v3351_v14 }
 0x50f   : > { %2849 = vrot.lane.b32.xlu0 %v2848_v17, %s4873_s22  ;;  %2844 = vrot.lane.b32.xlu1 %v2848_v17, %s4874_s23 }
 0x513   : > { %2859 = vrot.lane.b32.xlu0 %v2848_v17, %s3042_s25  ;;  %2854 = vrot.lane.b32.xlu1 %v2848_v17, %s3043_s26  ;;  %s4534_s25 = scalar_lea.vmem (%p3151_p5), %s4820_s13, %s2785_s19 }
 0x517   : > { %1122 = vperm.xlu0 %2821, %v2740_v18   ;;  %996 = vperm.xlu1 %2822, %v2720_v19  }
 0x51b   : > { %1146 = vperm.xlu0 %2821, %v1142_v20   ;;  %1127 = vperm.xlu1 %2822, %v2741_v21  }
 0x51f   : > { %1277 = vperm.xlu0 %2821, %v1243_v22   ;;  %1151 = vperm.xlu1 %2822, %v1143_v23  }
 0x523   : > { %1287 = vperm.xlu0 %2821, %v1245_v24   ;;  %1282 = vperm.xlu1 %2822, %v1244_v25  }
 0x527   : > { %1297 = vperm.xlu0 %2821, %v1247_v27   ;;  %1292 = vperm.xlu1 %2822, %v1246_v32  }
 0x52b   : > { %1307 = vperm.xlu0 %2821, %v1249_v33   ;;  %1302 = vperm.xlu1 %2822, %v1248_v34   ;;  %v988_v33 = vpack.c.bf16 %v3349_v12, %v3349_v12 }
 0x52d   : > { %v1003_v54 = vsel %vm597_vm0, %v988_v33, 0  ;;  %v2877_v33 = vld [vmem:[%s4818_s11 + $0x28] sm:$0xff]  }
 0x52f   : > { %1317 = vperm.xlu0 %2821, %v1251_v35   ;;  %1312 = vperm.xlu1 %2822, %v1250_v36  }
 0x533   : > { %1327 = vperm.xlu0 %2821, %v1253_v37   ;;  %1322 = vperm.xlu1 %2822, %v1252_v38  }
 0x537   : > { %1337 = vperm.xlu0 %2821, %v1255_v39   ;;  %1332 = vperm.xlu1 %2822, %v1254_v40  }
 0x53b   : > { %1347 = vperm.xlu0 %2821, %v1257_v41   ;;  %1342 = vperm.xlu1 %2822, %v1256_v42   ;;  %v2865_v41 = vld [vmem:[%s4814_s7 + $0x8] sm:$0xff]  }
 0x53f   : > { %1357 = vperm.xlu0 %2821, %v1259_v43   ;;  %1352 = vperm.xlu1 %2822, %v1258_v44  }
 0x543   : > { %1367 = vperm.xlu0 %2821, %v1261_v45   ;;  %1362 = vperm.xlu1 %2822, %v1260_v46  }
 0x547   : > { %1377 = vperm.xlu0 %2821, %v1263_v47   ;;  %1372 = vperm.xlu1 %2822, %v1262_v48  }
 0x54b   : > { %1387 = vperm.xlu0 %2821, %v1265_v49   ;;  %1382 = vperm.xlu1 %2822, %v1264_v50  }
 0x54f   : > { %1397 = vperm.xlu0 %2821, %v1267_v51   ;;  %1392 = vperm.xlu1 %2822, %v1266_v52  }
 0x553   : > { %1407 = vperm.xlu0 %2821, %v1269_v53   ;;  %1402 = vperm.xlu1 %2822, %v1268_v55  }
 0x557   : > { %1417 = vperm.xlu0 %2821, %v1271_v56   ;;  %1412 = vperm.xlu1 %2822, %v1270_v57  }
 0x55b   : > { %1427 = vperm.xlu0 %2821, %v1273_v58   ;;  %1422 = vperm.xlu1 %2822, %v1272_v60  }
 0x55f   : > { %1432 = vperm.xlu1 %2822, %v1274_v28  }
 0x581   : > { %v2850_v26 = vpop.permute.xlu0 %2849  ;;  %v2845_v1 = vpop.permute.xlu1 %2844 }
 0x582   : > { %v2852_v29 = vunpack.i.h.bf16 %v2850_v26  ;;  %v2851_v2 = vunpack.i.l.bf16 %v2850_v26  ;;  %v2847_v3 = vunpack.i.h.bf16 %v2845_v1  ;;  %v2846_v31 = vunpack.i.l.bf16 %v2845_v1 }
 0x584   : > { %v964_v4 = vsel %vm720_vm5, %v2851_v2, %v2852_v29  ;;  %v965_v5 = vsel %vm720_vm5, %v2852_v29, %v2851_v2  ;;  %v956_v7 = vsel %vm711_vm6, %v2846_v31, %v2847_v3  ;;  %v957_v8 = vsel %vm711_vm6, %v2847_v3, %v2846_v31 }
 0x585   : > { %v2722_v9 = vpack.c.bf16 %v964_v4, %v956_v7  ;;  %v2725_v11 = vpack.c.bf16 %v965_v5, %v957_v8  ;;  %v2860_v13 = vpop.permute.xlu0 %2859  ;;  %v2855_v17 = vpop.permute.xlu1 %2854 }
 0x586   : > { %v2862_v18 = vunpack.i.h.bf16 %v2860_v13  ;;  %v2861_v19 = vunpack.i.l.bf16 %v2860_v13  ;;  %v2857_v20 = vunpack.i.h.bf16 %v2855_v17  ;;  %v2856_v21 = vunpack.i.l.bf16 %v2855_v17 }
 0x587   : > { %2723 = vmatprep.subr.msk.bf16.mxu1 %vm3262_vm12, %v2722_v9 }
 0x588   : > { %v980_v22 = vsel %vm738_vm9, %v2861_v19, %v2862_v18  ;;  %v981_v23 = vsel %vm738_vm9, %v2862_v18, %v2861_v19  ;;  %v972_v24 = vsel %vm729_vm13, %v2856_v21, %v2857_v20  ;;  %v973_v25 = vsel %vm729_vm13, %v2857_v20, %v2856_v21  ;;  %2726 = vmatpush1.bf16.msk.msra.mxu1 %vm3269_vm14, %v2725_v11  ;;  %v2867_v19 = vld [vmem:[%s4818_s11] sm:$0xff]   ;;  %v2868_v20 = vld [vmem:[%s4818_s11 + $0x48] sm:$0xff]  }
 0x589   : > { %v2728_v27 = vpack.c.bf16 %v980_v22, %v972_v24  ;;  %v2731_v32 = vpack.c.bf16 %v981_v23, %v973_v25  ;;  %v2869_v21 = vld [vmem:[%s4818_s11 + $0x8] sm:$0xff]   ;;  %v2870_v22 = vld [vmem:[%s4818_s11 + $0x50] sm:$0xff]   ;;  %v2872_v24 = vld [vmem:[%s4818_s11 + $0x58] sm:$0xff]  }
 0x58a   : > { %v2871_v23 = vld [vmem:[%s4818_s11 + $0x10] sm:$0xff]   ;;  %v2873_v25 = vld [vmem:[%s4818_s11 + $0x18] sm:$0xff]  }
 0x58b   : > { %2729 = vmatprep.subr.msk.bf16.mxu1 %vm2705_vm3, %v2728_v27  ;;  %v2874_v27 = vld [vmem:[%s4818_s11 + $0x60] sm:$0xff]  }
 0x58c   : > { %2732 = vmatpush1.bf16.msk.msra.mxu1 %vm3299_vm8, %v2731_v32  ;;  %v2875_v32 = vld [vmem:[%s4818_s11 + $0x20] sm:$0xff]  }
 0x58d   : > { %2733 = vmatprep.subr.msk.bf16.mxu1 %vm597_vm0, %v989_v10  ;;  %v2876_v10 = vld [vmem:[%s4818_s11 + $0x68] sm:$0xff]  }
 0x590   : > { %1013 = vmatpush1.bf16.msra.mxu1 %v1003_v54  ;;  %v2878_v54 = vld [vmem:[%s4818_s11 + $0x70] sm:$0xff]  }
 0x593   : > { %2734 = vmatmul.mubr.msk.bf16.vlgmr.msra.gmra.mrb[12].mxu1 %vm756_vm4, %v2719_v63  ;;  %v2879_v63 = vld [vmem:[%s4818_s11 + $0x30] sm:$0xff]  }
 0x594   : > { %1194 = vmatprep.mubr.bf16.mxu1 %v3039_v6 }
 0x596   : > { %v997_v15 = vpop.permute.xlu1 %996  ;;  %v1123_v45 = vpop.permute.xlu0 %1122 }
 0x59a   : > { %v1128_v51 = vpop.permute.xlu1 %1127 }
 0x59e   : > { %v1152_v2 = vpop.permute.xlu1 %1151 }
 0x666   : > { %v1042_v16 = vpop.f32.mrb[12].mxu1 }
 0x667   : > { %v1043_v14 = vadd.f32 %v1042_v16, %v997_v15  ;;  %v1044_v12 = vpop.f32.mrb[13].mxu1  ;;  %v2881_v16 = vld [vmem:[%s4818_s11 + $0x38] sm:$0xff]  }
 0x668   : > { %v1045_v34 = vadd.f32 %v1044_v12, %v997_v15  ;;  %v1046_v30 = vpop.f32.mrb[14].mxu1  ;;  %v2880_v15 = vld [vmem:[%s4818_s11 + $0x78] sm:$0xff]  }
 0x669   : > { %v1052_v35 = vmax.f32 %v1043_v14, 0.0  ;;  %v1047_v36 = vpop.f32.mrb[15].mxu1  ;;  %v2882_v14 = vld [vmem:[%s4818_s11 + $0x40] sm:$0xff]  }
 0x66a   : > { %v1053_v37 = vmax.f32 %v1045_v34, 0.0  ;;  %v1283_v34 = vpop.permute.xlu1 %1282 }
 0x66b   : > { %v1054_v38 = vpack.c.bf16 %v1052_v35, %v1052_v35 }
 0x66c   : > { %v1055_v39 = vpack.c.bf16 %v1053_v37, %v1053_v37 }
 0x66d   : > { %v1065_v40 = vsel %vm597_vm0, %v1054_v38, 0 }
 0x66e   : > { %2738 = vmatprep.subr.msk.bf16.mxu0 %vm597_vm0, %v1055_v39  ;;  %v3602_v35 = vpop.permute.xlu1 %1292 }
 0x66f   : > { %1071 = vmatpush1.bf16.msra.mxu0 %v1065_v40 }
 0x672   : > { %2739 = vmatmul.mubr.msk.bf16.vlgmr.msra.gmra.mrb[8].mxu0 %vm818_vm10, %v2865_v41  ;;  %v3606_v37 = vpop.permute.xlu1 %1302 }
 0x673   : > { %1595 = vmatprep.mubr.bf16.mxu0 %v3039_v6 }
 0x676   : > { %v3610_v39 = vpop.permute.xlu1 %1312 }
 0x67a   : > { %v3614_v40 = vpop.permute.xlu1 %1322 }
 0x745   : > { %v1104_v42 = vpop.f32.mrb[8].mxu0 }
 0x746   : > { %v1113_v43 = vadd.f32 %v1104_v42, %v3334_v61  ;;  %v1106_v44 = vpop.f32.mrb[9].mxu0  ;;  %v3618_v42 = vpop.permute.xlu1 %1332 }
 0x747   : > { %v1114_v46 = vadd.f32 %v1106_v44, %v3331_v59  ;;  %v1108_v47 = vpop.f32.mrb[10].mxu0  ;;  %v2866_v59 = vld [vmem:[%s4816_s9] sm:$0xff]  }
 0x748   : > { %v1130_v48 = vadd.f32 %v1123_v45, %v1113_v43  ;;  %v1115_v49 = vadd.f32 %v1108_v47, %v3336_v62  ;;  %v1110_v50 = vpop.f32.mrb[11].mxu0  ;;  %v1147_v62 = vpop.permute.xlu0 %1146 }
 0x749   : > { %v1131_v52 = vadd.f32 %v1123_v45, %v1114_v46  ;;  %v1116_v53 = vadd.f32 %v1110_v50, %v3338_v0 }
 0x74a   : > { %v1132_v55 = vadd.f32 %v1128_v51, %v1115_v49  ;;  %v1136_v57 = vmax.f32 %v1130_v48, 0.0  ;;  %v3622_v44 = vpop.permute.xlu1 %1342 }
 0x74b   : > { %v1133_v56 = vadd.f32 %v1128_v51, %v1116_v53  ;;  %v1137_v60 = vmax.f32 %v1131_v52, 0.0 }
 0x74c   : > { %v1138_v58 = vmax.f32 %v1132_v55, 0.0  ;;  %v1278_v12 = vpop.permute.xlu0 %1277 }
 0x74d   : > { %v1139_v28 = vmax.f32 %v1133_v56, 0.0 }
 0x74e   : > { %v1140_v61 = vpack.c.bf16 %v1138_v58, %v1136_v57  ;;  %v3626_v46 = vpop.permute.xlu1 %1352 }
 0x74f   : > { %v1141_v26 = vpack.c.bf16 %v1139_v28, %v1137_v60 }
 0x750   : > { %v1288_v30 = vpop.permute.xlu0 %1287 }
 0x751   : > { %1162 = vmatprep.subr.bf16.mxu1 %v1141_v26 }
 0x752   : > { %1163 = vmatpush1.bf16.msra.mxu1 %v1140_v61  ;;  %v3630_v48 = vpop.permute.xlu1 %1362 }
 0x754   : > { %v3604_v36 = vpop.permute.xlu0 %1297 }
 0x755   : > { %2743 = vmatmul.mubr.msk.bf16.vlgmr.msra.gmra.mrb[16].mxu1 %vm660_vm2, %v2866_v59 }
 0x756   : > { %1685 = vmatprep.mubr.bf16.mxu1 %v3039_v6  ;;  %v1373_v50 = vpop.permute.xlu1 %1372 }
 0x758   : > { %v3608_v38 = vpop.permute.xlu0 %1307 }
 0x828   : > { %v1196_v0 = vpop.f32.mrb[16].mxu1 }
 0x829   : > { %v1197_v1 = vadd.f32 %v1196_v0, %v1147_v62  ;;  %v1198_v29 = vpop.f32.mrb[17].mxu1 }
 0x82a   : > { %v1199_v3 = vadd.f32 %v1198_v29, %v1147_v62  ;;  %v1200_v31 = vpop.f32.mrb[18].mxu1 }
 0x82b   : > { %v1201_v4 = vadd.f32 %v1200_v31, %v1152_v2  ;;  %v1202_v5 = vpop.f32.mrb[19].mxu1  ;;  %v1205_v8 = vmax.f32 %v1197_v1, 0.0 }
 0x82c   : > { %v1203_v7 = vadd.f32 %v1202_v5, %v1152_v2  ;;  %v1206_v11 = vmax.f32 %v1199_v3, 0.0  ;;  %v1383_v3 = vpop.permute.xlu1 %1382 }
 0x82d   : > { %v1207_v9 = vmax.f32 %v1201_v4, 0.0 }
 0x82e   : > { %v1208_v13 = vmax.f32 %v1203_v7, 0.0 }
 0x82f   : > { %v1241_v17 = vpack.c.bf16 %v1207_v9, %v1205_v8 }
 0x830   : > { %v1242_v18 = vpack.c.bf16 %v1208_v13, %v1206_v11 }
 0x832   : > { %1563 = vmatprep.subr.bf16.mxu0 %v1242_v18  ;;  %2787 = vmatprep.subr.bf16.mxu1 %v1242_v18 }
 0x833   : > { %1564 = vmatpush1.bf16.msra.mxu0 %v1241_v17  ;;  %2788 = vmatpush1.bf16.msra.mxu1 %v1241_v17 }
 0x836   : > { %2760 = vmatmul.mubr.msk.bf16.vlgmr.msra.gmra.mrb[12].mxu0 %vm660_vm2, %v2867_v19  ;;  %2769 = vmatmul.mubr.msk.bf16.vlgmr.msra.gmra.mrb[20].mxu1 %vm660_vm2, %v2868_v20 }
 0x837   : > { %1605 = vmatprep.mubr.bf16.mxu0 %v3039_v6  ;;  %1695 = vmatprep.mubr.bf16.mxu1 %v3039_v6 }
 0x83e   : > { %2761 = vmatmul.mubr.msk.bf16.gmra.mrb[16].mxu0 %vm660_vm2, %v2869_v21  ;;  %2770 = vmatmul.mubr.msk.bf16.gmra.mrb[24].mxu1 %vm660_vm2, %v2870_v22 }
 0x83f   : > { %1615 = vmatprep.mubr.bf16.mxu0 %v3039_v6  ;;  %1705 = vmatprep.mubr.bf16.mxu1 %v3039_v6 }
 0x846   : > { %2762 = vmatmul.mubr.msk.bf16.gmra.mrb[20].mxu0 %vm660_vm2, %v2871_v23  ;;  %2771 = vmatmul.mubr.msk.bf16.gmra.mrb[28].mxu1 %vm660_vm2, %v2872_v24 }
 0x847   : > { %1625 = vmatprep.mubr.bf16.mxu0 %v3039_v6  ;;  %1715 = vmatprep.mubr.bf16.mxu1 %v3039_v6 }
 0x84e   : > { %2763 = vmatmul.mubr.msk.bf16.gmra.mrb[24].mxu0 %vm660_vm2, %v2873_v25  ;;  %2772 = vmatmul.mubr.msk.bf16.gmra.mrb[32].mxu1 %vm660_vm2, %v2874_v27 }
 0x84f   : > { %1635 = vmatprep.mubr.bf16.mxu0 %v3039_v6  ;;  %1725 = vmatprep.mubr.bf16.mxu1 %v3039_v6 }
 0x856   : > { %2764 = vmatmul.mubr.msk.bf16.gmra.mrb[28].mxu0 %vm660_vm2, %v2875_v32  ;;  %2773 = vmatmul.mubr.msk.bf16.gmra.mrb[36].mxu1 %vm660_vm2, %v2876_v10  ;;  %v1393_v32 = vpop.permute.xlu1 %1392 }
 0x857   : > { %1645 = vmatprep.mubr.bf16.mxu0 %v3039_v6  ;;  %1735 = vmatprep.mubr.bf16.mxu1 %v3039_v6 }
 0x85e   : > { %2765 = vmatmul.mubr.msk.bf16.gmra.mrb[32].mxu0 %vm660_vm2, %v2877_v33  ;;  %2774 = vmatmul.mubr.msk.bf16.gmra.mrb[40].mxu1 %vm660_vm2, %v2878_v54 }
 0x85f   : > { %1655 = vmatprep.mubr.bf16.mxu0 %v3039_v6  ;;  %1745 = vmatprep.mubr.bf16.mxu1 %v3039_v6 }
 0x866   : > { %2766 = vmatmul.mubr.msk.bf16.gmra.mrb[36].mxu0 %vm660_vm2, %v2879_v63  ;;  %2775 = vmatmul.mubr.msk.bf16.gmra.mrb[44].mxu1 %vm660_vm2, %v2880_v15 }
 0x867   : > { %1665 = vmatprep.mubr.bf16.mxu0 %v3039_v6 }
 0x86e   : > { %2767 = vmatmul.mubr.msk.bf16.gmra.mrb[40].mxu0 %vm660_vm2, %v2881_v16 }
 0x86f   : > { %1675 = vmatprep.mubr.bf16.mxu0 %v3039_v6  ;;  %v3612_v6 = vpop.permute.xlu0 %1317 }
 0x873   : > { %v3616_v41 = vpop.permute.xlu0 %1327 }
 0x876   : > { %2768 = vmatmul.mubr.msk.bf16.gmra.mrb[44].mxu0 %vm660_vm2, %v2882_v14 }
 0x877   : > { %v3620_v43 = vpop.permute.xlu0 %1337 }
 0x87b   : > { %v3624_v45 = vpop.permute.xlu0 %1347 }
 0x87f   : > { %v3628_v47 = vpop.permute.xlu0 %1357 }
 0x883   : > { %v1368_v49 = vpop.permute.xlu0 %1367 }
 0x887   : > { %v1378_v2 = vpop.permute.xlu0 %1377 }
 0x88b   : > { %v1388_v27 = vpop.permute.xlu0 %1387 }
 0x909   : > { %v1597_v51 = vpop.f32.mrb[12].mxu0  ;;  %v1687_v52 = vpop.f32.mrb[20].mxu1 }
 0x90a   : > { %v3636_v53 = vadd.f32 %v1597_v51, %v1278_v12  ;;  %v3638_v55 = vadd.f32 %v1687_v52, %v1368_v49  ;;  %v1599_v56 = vpop.f32.mrb[13].mxu0  ;;  %v1689_v57 = vpop.f32.mrb[21].mxu1 }
 0x90b   : > { %v3640_v58 = vadd.f32 %v1599_v56, %v1278_v12  ;;  %v3642_v60 = vadd.f32 %v1689_v57, %v1368_v49  ;;  %v1601_v28 = vpop.f32.mrb[14].mxu0  ;;  %v1691_v61 = vpop.f32.mrb[22].mxu1 }
 0x90c   : > { %1756 = vst [vmem:[%s3645_s29] sm:$0xff] %v3636_v53  ;;  %1792 = vst [vmem:[%s3645_s29 + $0x120] sm:$0xff] %v3638_v55  ;;  %v3651_v26 = vadd.f32 %v1601_v28, %v1283_v34  ;;  %v3653_v59 = vadd.f32 %v1691_v61, %v1373_v50  ;;  %v1603_v62 = vpop.f32.mrb[15].mxu0  ;;  %v1693_v0 = vpop.f32.mrb[23].mxu1 }
 0x90d   : > { %4876 = vst [vmem:[#allocation5_spill] sm:$0xff] %v3642_v60  ;;  %1757 = vst [vmem:[%s3645_s29 + $0x8] sm:$0xff] %v3640_v58  ;;  %v3659_v1 = vadd.f32 %v1603_v62, %v1283_v34  ;;  %v3661_v29 = vadd.f32 %v1693_v0, %v1373_v50  ;;  %v1398_v0 = vpop.permute.xlu0 %1397 }
 0x90e   : > { %1793 = vst [vmem:[%s3645_s29 + $0x128] sm:$0xff] %v3642_v60  ;;  %1758 = vst [vmem:[%s3645_s29 + $0x10] sm:$0xff] %v3651_v26  ;;  %v1836_v25 = vmax.f32 %v3653_v59, %v3638_v55 }
 0x90f   : > { %4877 = vst [vmem:[#allocation6_spill] sm:$0xff] %v3661_v29  ;;  %1794 = vst [vmem:[%s3645_s29 + $0x130] sm:$0xff] %v3653_v59  ;;  %v1873_v56 = vmax.f32 %v3661_v29, %v3642_v60 }
 0x910   : > { %1759 = vst [vmem:[%s3645_s29 + $0x18] sm:$0xff] %v3659_v1  ;;  %1795 = vst [vmem:[%s3645_s29 + $0x138] sm:$0xff] %v3661_v29 }
 0x911   : > { %v1607_v31 = vpop.f32.mrb[16].mxu0  ;;  %v1697_v4 = vpop.f32.mrb[24].mxu1 }
 0x912   : > { %v3671_v5 = vadd.f32 %v1607_v31, %v1288_v30  ;;  %v3673_v7 = vadd.f32 %v1697_v4, %v1378_v2  ;;  %v1609_v8 = vpop.f32.mrb[17].mxu0  ;;  %v1699_v9 = vpop.f32.mrb[25].mxu1 }
 0x913   : > { %v3675_v11 = vadd.f32 %v1609_v8, %v1288_v30  ;;  %v3677_v13 = vadd.f32 %v1699_v9, %v1378_v2  ;;  %v1611_v17 = vpop.f32.mrb[18].mxu0  ;;  %v1701_v18 = vpop.f32.mrb[26].mxu1 }
 0x914   : > { %1760 = vst [vmem:[%s3645_s29 + $0x20] sm:$0xff] %v3671_v5  ;;  %1796 = vst [vmem:[%s3645_s29 + $0x140] sm:$0xff] %v3673_v7  ;;  %v3684_v19 = vadd.f32 %v1611_v17, %v3602_v35  ;;  %v3686_v20 = vadd.f32 %v1701_v18, %v1383_v3  ;;  %v1613_v21 = vpop.f32.mrb[19].mxu0  ;;  %v1703_v22 = vpop.f32.mrb[27].mxu1  ;;  %v1838_v10 = vmax.f32 %v1836_v25, %v3673_v7 }
 0x915   : > { %4878 = vst [vmem:[#allocation7_spill] sm:$0xff] %v3677_v13  ;;  %1761 = vst [vmem:[%s3645_s29 + $0x28] sm:$0xff] %v3675_v11  ;;  %v3693_v23 = vadd.f32 %v1613_v21, %v3602_v35  ;;  %v3695_v24 = vadd.f32 %v1703_v22, %v1383_v3  ;;  %v1875_v62 = vmax.f32 %v1873_v56, %v3677_v13  ;;  %v1403_v2 = vpop.permute.xlu1 %1402 }
 0x916   : > { %1797 = vst [vmem:[%s3645_s29 + $0x148] sm:$0xff] %v3677_v13  ;;  %1762 = vst [vmem:[%s3645_s29 + $0x30] sm:$0xff] %v3684_v19  ;;  %v1840_v49 = vmax.f32 %v1838_v10, %v3686_v20 }
 0x917   : > { %4879 = vst [vmem:[#allocation8_spill] sm:$0xff] %v3695_v24  ;;  %1798 = vst [vmem:[%s3645_s29 + $0x150] sm:$0xff] %v3686_v20  ;;  %v1877_v18 = vmax.f32 %v1875_v62, %v3695_v24 }
 0x918   : > { %1763 = vst [vmem:[%s3645_s29 + $0x38] sm:$0xff] %v3693_v23  ;;  %1799 = vst [vmem:[%s3645_s29 + $0x158] sm:$0xff] %v3695_v24 }
 0x919   : > { %v1617_v33 = vpop.f32.mrb[20].mxu0  ;;  %v1707_v54 = vpop.f32.mrb[28].mxu1 }
 0x91a   : > { %v3709_v63 = vadd.f32 %v1617_v33, %v3604_v36  ;;  %v3711_v15 = vadd.f32 %v1707_v54, %v1388_v27  ;;  %v1619_v16 = vpop.f32.mrb[21].mxu0  ;;  %v1709_v14 = vpop.f32.mrb[29].mxu1 }
 0x91b   : > { %v3714_v12 = vadd.f32 %v1619_v16, %v3604_v36  ;;  %v3716_v34 = vadd.f32 %v1709_v14, %v1388_v27  ;;  %v1621_v30 = vpop.f32.mrb[22].mxu0  ;;  %v1711_v35 = vpop.f32.mrb[30].mxu1 }
 0x91c   : > { %4880 = vst [vmem:[#allocation9_spill] sm:$0xff] %v3711_v15  ;;  %1764 = vst [vmem:[%s3645_s29 + $0x40] sm:$0xff] %v3709_v63  ;;  %v3724_v50 = vadd.f32 %v1621_v30, %v3606_v37  ;;  %v3726_v51 = vadd.f32 %v1711_v35, %v1393_v32  ;;  %v1623_v36 = vpop.f32.mrb[23].mxu0  ;;  %v1713_v52 = vpop.f32.mrb[31].mxu1  ;;  %v1842_v61 = vmax.f32 %v1840_v49, %v3711_v15 }
 0x91d   : > { %4881 = vst [vmem:[#allocation10_spill] sm:$0xff] %v3716_v34  ;;  %1800 = vst [vmem:[%s3645_s29 + $0x160] sm:$0xff] %v3711_v15  ;;  %v3735_v57 = vadd.f32 %v1623_v36, %v3606_v37  ;;  %v3737_v28 = vadd.f32 %v1713_v52, %v1393_v32  ;;  %v1879_v16 = vmax.f32 %v1877_v18, %v3716_v34  ;;  %v1413_v52 = vpop.permute.xlu1 %1412 }
 0x91e   : > { %4882 = vst [vmem:[#allocation11_spill] sm:$0xff] %v3726_v51  ;;  %1765 = vst [vmem:[%s3645_s29 + $0x48] sm:$0xff] %v3714_v12  ;;  %v1844_v31 = vmax.f32 %v1842_v61, %v3726_v51  ;;  %v1820_v35 = vmax.f32 %v3636_v53, %v3671_v5  ;;  %v1821_v36 = vmax.f32 %v3651_v26, %v3684_v19 }
 0x91f   : > { %1801 = vst [vmem:[%s3645_s29 + $0x168] sm:$0xff] %v3716_v34  ;;  %4883 = vst [vmem:[#allocation12_spill] sm:$0xff] %v3735_v57  ;;  %v1881_v62 = vmax.f32 %v1879_v16, %v3737_v28 }
 0x920   : > { %4884 = vst [vmem:[#allocation13_spill] sm:$0xff] %v3737_v28  ;;  %1766 = vst [vmem:[%s3645_s29 + $0x50] sm:$0xff] %v3724_v50  ;;  %v1822_v56 = vmax.f32 %v1820_v35, %v3709_v63  ;;  %v1823_v61 = vmax.f32 %v1821_v36, %v3724_v50 }
 0x921   : > { %1802 = vst [vmem:[%s3645_s29 + $0x170] sm:$0xff] %v3726_v51  ;;  %1767 = vst [vmem:[%s3645_s29 + $0x58] sm:$0xff] %v3735_v57  ;;  %v1627_v37 = vpop.f32.mrb[24].mxu0  ;;  %v1717_v3 = vpop.f32.mrb[32].mxu1 }
 0x922   : > { %1803 = vst [vmem:[%s3645_s29 + $0x178] sm:$0xff] %v3737_v28  ;;  %v3751_v4 = vadd.f32 %v1627_v37, %v3608_v38  ;;  %v3753_v8 = vadd.f32 %v1717_v3, %v1398_v0  ;;  %v1629_v9 = vpop.f32.mrb[25].mxu0  ;;  %v1719_v17 = vpop.f32.mrb[33].mxu1 }
 0x923   : > { %v3757_v21 = vadd.f32 %v1629_v9, %v3608_v38  ;;  %v3759_v22 = vadd.f32 %v1719_v17, %v1398_v0  ;;  %v1631_v25 = vpop.f32.mrb[26].mxu0  ;;  %v1721_v27 = vpop.f32.mrb[34].mxu1 }
 0x924   : > { %1768 = vst [vmem:[%s3645_s29 + $0x60] sm:$0xff] %v3751_v4  ;;  %v1846_v32 = vmax.f32 %v1844_v31, %v3753_v8  ;;  %1804 = vst [vmem:[%s3645_s29 + $0x180] sm:$0xff] %v3753_v8  ;;  %v3767_v10 = vadd.f32 %v1631_v25, %v3610_v39  ;;  %v3769_v33 = vadd.f32 %v1721_v27, %v1403_v2  ;;  %v1633_v38 = vpop.f32.mrb[27].mxu0  ;;  %v1723_v54 = vpop.f32.mrb[35].mxu1 }
 0x925   : > { %4885 = vst [vmem:[#allocation14_spill] sm:$0xff] %v3757_v21  ;;  %4886 = vst [vmem:[#allocation15_spill] sm:$0xff] %v3759_v22  ;;  %v3777_v14 = vadd.f32 %v1633_v38, %v3610_v39  ;;  %v3779_v30 = vadd.f32 %v1723_v54, %v1403_v2  ;;  %v1408_v39 = vpop.permute.xlu0 %1407  ;;  %v1824_v37 = vmax.f32 %v1822_v56, %v3751_v4 }
 0x926   : > { %1769 = vst [vmem:[%s3645_s29 + $0x68] sm:$0xff] %v3757_v21  ;;  %1805 = vst [vmem:[%s3645_s29 + $0x188] sm:$0xff] %v3759_v22  ;;  %v1848_v49 = vmax.f32 %v1846_v32, %v3769_v33  ;;  %v1883_v18 = vmax.f32 %v1881_v62, %v3759_v22  ;;  %v1825_v25 = vmax.f32 %v1823_v61, %v3767_v10 }
 0x927   : > { %4887 = vst [vmem:[#allocation16_spill] sm:$0xff] %v3777_v14  ;;  %4888 = vst [vmem:[#allocation17_spill] sm:$0xff] %v3779_v30 }
 0x928   : > { %1770 = vst [vmem:[%s3645_s29 + $0x70] sm:$0xff] %v3767_v10  ;;  %1806 = vst [vmem:[%s3645_s29 + $0x190] sm:$0xff] %v3769_v33 }
 0x929   : > { %1771 = vst [vmem:[%s3645_s29 + $0x78] sm:$0xff] %v3777_v14  ;;  %1807 = vst [vmem:[%s3645_s29 + $0x198] sm:$0xff] %v3779_v30  ;;  %v1637_v0 = vpop.f32.mrb[28].mxu0  ;;  %v1727_v2 = vpop.f32.mrb[36].mxu1 }
 0x92a   : > { %v3799_v3 = vadd.f32 %v1637_v0, %v3612_v6  ;;  %v3801_v31 = vadd.f32 %v1727_v2, %v1408_v39  ;;  %v1639_v9 = vpop.f32.mrb[29].mxu0  ;;  %v1729_v17 = vpop.f32.mrb[37].mxu1  ;;  %v1885_v2 = vmax.f32 %v1883_v18, %v3779_v30 }
 0x92b   : > { %v3806_v27 = vadd.f32 %v1639_v9, %v3612_v6  ;;  %v3808_v32 = vadd.f32 %v1729_v17, %v1408_v39  ;;  %v1641_v38 = vpop.f32.mrb[30].mxu0  ;;  %v1731_v54 = vpop.f32.mrb[38].mxu1 }
 0x92c   : > { %1772 = vst [vmem:[%s3645_s29 + $0x80] sm:$0xff] %v3799_v3  ;;  %v3813_v16 = vmax.f32 %v1824_v37, %v3799_v3  ;;  %v1837_v35 = vmax.f32 %v3801_v31, %v1848_v49  ;;  %1808 = vst [vmem:[%s3645_s29 + $0x1a0] sm:$0xff] %v3801_v31  ;;  %v3819_v6 = vadd.f32 %v1641_v38, %v3614_v40  ;;  %v1643_v39 = vpop.f32.mrb[31].mxu0  ;;  %v1733_v56 = vpop.f32.mrb[39].mxu1 }
 0x92d   : > { %4889 = vst [vmem:[#allocation18_spill] sm:$0xff] %v3806_v27  ;;  %4890 = vst [vmem:[#allocation19_spill] sm:$0xff] %v3808_v32  ;;  %v3821_v36 = vadd.f32 %v1731_v54, %v1413_v52  ;;  %v3828_v61 = vadd.f32 %v1643_v39, %v3614_v40  ;;  %v3830_v62 = vadd.f32 %v1733_v56, %v1413_v52  ;;  %v1418_v37 = vpop.permute.xlu0 %1417  ;;  %v1423_v40 = vpop.permute.xlu1 %1422 }
 0x92e   : > { %1773 = vst [vmem:[%s3645_s29 + $0x88] sm:$0xff] %v3806_v27  ;;  %1809 = vst [vmem:[%s3645_s29 + $0x1a8] sm:$0xff] %v3808_v32  ;;  %v3835_v49 = vmax.f32 %v1825_v25, %v3819_v6  ;;  %v1857_v52 = vmax.f32 %v3640_v58, %v3675_v11  ;;  %v1872_v9 = vmax.f32 %v3808_v32, %v1885_v2 }
 0x92f   : > { %4891 = vst [vmem:[#allocation20_spill] sm:$0xff] %v3828_v61  ;;  %4892 = vst [vmem:[#allocation21_spill] sm:$0xff] %v3830_v62  ;;  %v1839_v0 = vmax.f32 %v1837_v35, %v3821_v36  ;;  %v1858_v39 = vmax.f32 %v3659_v1, %v3693_v23 }
 0x930   : > { %1774 = vst [vmem:[%s3645_s29 + $0x90] sm:$0xff] %v3819_v6  ;;  %1810 = vst [vmem:[%s3645_s29 + $0x1b0] sm:$0xff] %v3821_v36  ;;  %v1859_v56 = vmax.f32 %v1857_v52, %v3714_v12  ;;  %v1874_v28 = vmax.f32 %v1872_v9, %v3830_v62 }
 0x931   : > { %1775 = vst [vmem:[%s3645_s29 + $0x98] sm:$0xff] %v3828_v61  ;;  %1811 = vst [vmem:[%s3645_s29 + $0x1b8] sm:$0xff] %v3830_v62  ;;  %v1647_v17 = vpop.f32.mrb[32].mxu0  ;;  %v1737_v25 = vpop.f32.mrb[40].mxu1 }
 0x932   : > { %v3849_v38 = vadd.f32 %v1647_v17, %v3616_v41  ;;  %v3851_v54 = vadd.f32 %v1737_v25, %v1418_v37  ;;  %v1649_v18 = vpop.f32.mrb[33].mxu0  ;;  %v1739_v35 = vpop.f32.mrb[41].mxu1 }
 0x933   : > { %v3857_v30 = vadd.f32 %v1649_v18, %v3616_v41  ;;  %v3859_v2 = vadd.f32 %v1739_v35, %v1418_v37  ;;  %v1651_v32 = vpop.f32.mrb[34].mxu0  ;;  %v1741_v22 = vpop.f32.mrb[42].mxu1  ;;  %v1860_v35 = vmax.f32 %v1858_v39, %v3735_v57 }
 0x934   : > { %1776 = vst [vmem:[%s3645_s29 + $0xa0] sm:$0xff] %v3849_v38  ;;  %v1828_v17 = vmax.f32 %v3813_v16, %v3849_v38  ;;  %v1841_v25 = vmax.f32 %v1839_v0, %v3851_v54  ;;  %1812 = vst [vmem:[%s3645_s29 + $0x1c0] sm:$0xff] %v3851_v54  ;;  %v3869_v52 = vadd.f32 %v1651_v32, %v3618_v42  ;;  %v1653_v37 = vpop.f32.mrb[35].mxu0  ;;  %v1743_v18 = vpop.f32.mrb[43].mxu1 }
 0x935   : > { %4893 = vst [vmem:[#allocation22_spill] sm:$0xff] %v3859_v2  ;;  %v3871_v41 = vadd.f32 %v1741_v22, %v1423_v40  ;;  %1777 = vst [vmem:[%s3645_s29 + $0xa8] sm:$0xff] %v3857_v30  ;;  %v3880_v16 = vadd.f32 %v1653_v37, %v3618_v42  ;;  %v3882_v0 = vadd.f32 %v1743_v18, %v1423_v40  ;;  %v1428_v42 = vpop.permute.xlu0 %1427  ;;  %v1433_v40 = vpop.permute.xlu1 %1432 }
 0x936   : > { %1813 = vst [vmem:[%s3645_s29 + $0x1c8] sm:$0xff] %v3859_v2  ;;  %v1861_v22 = vmax.f32 %v1859_v56, %v3757_v21  ;;  %1778 = vst [vmem:[%s3645_s29 + $0xb0] sm:$0xff] %v3869_v52  ;;  %v1829_v32 = vmax.f32 %v3835_v49, %v3869_v52  ;;  %v1862_v9 = vmax.f32 %v1860_v35, %v3777_v14 }
 0x937   : > { %4894 = vst [vmem:[#allocation23_spill] sm:$0xff] %v3882_v0  ;;  %v1843_v39 = vmax.f32 %v1841_v25, %v3871_v41  ;;  %1814 = vst [vmem:[%s3645_s29 + $0x1d0] sm:$0xff] %v3871_v41  ;;  %v1876_v62 = vmax.f32 %v1874_v28, %v3859_v2 }
 0x938   : > { %1779 = vst [vmem:[%s3645_s29 + $0xb8] sm:$0xff] %v3880_v16  ;;  %1815 = vst [vmem:[%s3645_s29 + $0x1d8] sm:$0xff] %v3882_v0  ;;  %v1863_v56 = vmax.f32 %v1861_v22, %v3806_v27  ;;  %v1864_v37 = vmax.f32 %v1862_v9, %v3828_v61 }
 0x939   : > { %v1657_v49 = vpop.f32.mrb[36].mxu0  ;;  %v1747_v25 = vpop.f32.mrb[44].mxu1  ;;  %v1878_v13 = vmax.f32 %v1876_v62, %v3882_v0 }
 0x93a   : > { %v1865_v18 = vmax.f32 %v1863_v56, %v3857_v30  ;;  %v3902_v35 = vadd.f32 %v1657_v49, %v3620_v43  ;;  %v3904_v28 = vadd.f32 %v1747_v25, %v1428_v42  ;;  %v1659_v2 = vpop.f32.mrb[37].mxu0  ;;  %v1749_v34 = vpop.f32.mrb[45].mxu1  ;;  %v1866_v24 = vmax.f32 %v1864_v37, %v3880_v16 }
 0x93b   : > { %v3909_v22 = vadd.f32 %v1659_v2, %v3620_v43  ;;  %v3911_v9 = vadd.f32 %v1749_v34, %v1428_v42  ;;  %v1661_v29 = vpop.f32.mrb[38].mxu0  ;;  %v1751_v56 = vpop.f32.mrb[46].mxu1 }
 0x93c   : > { %1780 = vst [vmem:[%s3645_s29 + $0xc0] sm:$0xff] %v3902_v35  ;;  %v1830_v49 = vmax.f32 %v1828_v17, %v3902_v35  ;;  %v1845_v25 = vmax.f32 %v1843_v39, %v3904_v28  ;;  %1816 = vst [vmem:[%s3645_s29 + $0x1e0] sm:$0xff] %v3904_v28  ;;  %v3920_v62 = vadd.f32 %v1661_v29, %v3622_v44  ;;  %v1663_v34 = vpop.f32.mrb[39].mxu0  ;;  %v1753_v2 = vpop.f32.mrb[47].mxu1 }
 0x93d   : > { %v3922_v43 = vadd.f32 %v1751_v56, %v1433_v40  ;;  %1781 = vst [vmem:[%s3645_s29 + $0xc8] sm:$0xff] %v3909_v22  ;;  %v1867_v42 = vmax.f32 %v1865_v18, %v3909_v22  ;;  %v1880_v17 = vmax.f32 %v1878_v13, %v3911_v9  ;;  %1817 = vst [vmem:[%s3645_s29 + $0x1e8] sm:$0xff] %v3911_v9 }
 0x93e   : > { %v3931_v39 = vadd.f32 %v1663_v34, %v3622_v44  ;;  %v3933_v37 = vadd.f32 %v1753_v2, %v1433_v40  ;;  %1782 = vst [vmem:[%s3645_s29 + $0xd0] sm:$0xff] %v3920_v62  ;;  %v1831_v29 = vmax.f32 %v1829_v32, %v3920_v62 }
 0x93f   : > { %v1847_v56 = vmax.f32 %v1845_v25, %v3922_v43  ;;  %1818 = vst [vmem:[%s3645_s29 + $0x1f0] sm:$0xff] %v3922_v43 }
 0x940   : > { %1783 = vst [vmem:[%s3645_s29 + $0xd8] sm:$0xff] %v3931_v39  ;;  %v1868_v13 = vmax.f32 %v1866_v24, %v3931_v39  ;;  %v1882_v18 = vmax.f32 %v1880_v17, %v3933_v37  ;;  %1819 = vst [vmem:[%s3645_s29 + $0x1f8] sm:$0xff] %v3933_v37 }
 0x941   : > { %v1667_v44 = vpop.f32.mrb[40].mxu0 }
 0x942   : > { %v3948_v40 = vadd.f32 %v1667_v44, %v3624_v45  ;;  %v1669_v32 = vpop.f32.mrb[41].mxu0 }
 0x943   : > { %v3951_v34 = vadd.f32 %v1669_v32, %v3624_v45  ;;  %v1671_v25 = vpop.f32.mrb[42].mxu0 }
 0x944   : > { %1784 = vst [vmem:[%s3645_s29 + $0xe0] sm:$0xff] %v3948_v40  ;;  %v1832_v2 = vmax.f32 %v1830_v49, %v3948_v40  ;;  %v3957_v24 = vadd.f32 %v1671_v25, %v3626_v46  ;;  %v1673_v17 = vpop.f32.mrb[43].mxu0 }
 0x945   : > { %1785 = vst [vmem:[%s3645_s29 + $0xe8] sm:$0xff] %v3951_v34  ;;  %v1869_v0 = vmax.f32 %v1867_v42, %v3951_v34  ;;  %v3963_v44 = vadd.f32 %v1673_v17, %v3626_v46 }
 0x946   : > { %1786 = vst [vmem:[%s3645_s29 + $0xf0] sm:$0xff] %v3957_v24  ;;  %v1833_v45 = vmax.f32 %v1831_v29, %v3957_v24 }
 0x947   : > { %1787 = vst [vmem:[%s3645_s29 + $0xf8] sm:$0xff] %v3963_v44  ;;  %v1870_v49 = vmax.f32 %v1868_v13, %v3963_v44 }
 0x949   : > { %v1884_v32 = vmax.f32 %v1882_v18, %v1870_v49  ;;  %v1677_v25 = vpop.f32.mrb[44].mxu0 }
 0x94a   : > { %v3972_v60 = vadd.f32 %v1677_v25, %v3628_v47  ;;  %v1679_v42 = vpop.f32.mrb[45].mxu0 }
 0x94b   : > { %v3975_v61 = vadd.f32 %v1679_v42, %v3628_v47  ;;  %v1681_v46 = vpop.f32.mrb[46].mxu0 }
 0x94c   : > { %1788 = vst [vmem:[%s3645_s29 + $0x100] sm:$0xff] %v3972_v60  ;;  %v1834_v29 = vmax.f32 %v1832_v2, %v3972_v60  ;;  %v3981_v17 = vadd.f32 %v1681_v46, %v3630_v48  ;;  %v1683_v27 = vpop.f32.mrb[47].mxu0 }
 0x94d   : > { %1789 = vst [vmem:[%s3645_s29 + $0x108] sm:$0xff] %v3975_v61  ;;  %v1871_v13 = vmax.f32 %v1869_v0, %v3975_v61  ;;  %v3987_v18 = vadd.f32 %v1683_v27, %v3630_v48 }
 0x94e   : > { %v1849_v49 = vmax.f32 %v1847_v56, %v1834_v29  ;;  %1790 = vst [vmem:[%s3645_s29 + $0x110] sm:$0xff] %v3981_v17  ;;  %v1835_v47 = vmax.f32 %v1833_v45, %v3981_v17 }
 0x94f   : > { %v1886_v25 = vmax.f32 %v1884_v32, %v1871_v13  ;;  %1791 = vst [vmem:[%s3645_s29 + $0x118] sm:$0xff] %v3987_v18 }
 0x950   : > { %v1850_v2 = vmax.f32 %v1835_v47, %v1849_v49 }
 0x951   : > { %v1887_v42 = vmax.f32 %v3987_v18, %v1886_v25 }
 0x952   : > { %v1851_v46 = vrot.slane %v1850_v2, 4 }
 0x953   : > { %v1888_v0 = vrot.slane %v1887_v42, 4 }
 0x954   : > { %v1852_v14 = vmax.f32 %v1850_v2, %v1851_v46 }
 0x955   : > { %v1889_v56 = vmax.f32 %v1887_v42, %v1888_v0 }
 0x956   : > { %v1853_v51 = vrot.slane %v1852_v14, 2 }
 0x957   : > { %v1890_v49 = vrot.slane %v1889_v56, 2 }
 0x958   : > { %v1854_v21 = vmax.f32 %v1852_v14, %v1853_v51 }
 0x959   : > { %v1891_v47 = vmax.f32 %v1889_v56, %v1890_v49 }
 0x95a   : > { %v1855_v15 = vrot.slane %v1854_v21, 1 }
 0x95c   : > { %v3995_v57 = vmax.f32 %v1854_v21, %v1855_v15 }
 0x95e   : > { %v1906_v48 = vsub.f32 %v3751_v4, %v3995_v57  ;;  %v1908_v27 = vsub.f32 %v3767_v10, %v3995_v57  ;;  %v1910_v45 = vsub.f32 %v3799_v3, %v3995_v57  ;;  %v1912_v32 = vsub.f32 %v3819_v6, %v3995_v57 }
 0x95f   : > { %v1914_v51 = vsub.f32 %v3849_v38, %v3995_v57  ;;  %v1916_v15 = vsub.f32 %v3869_v52, %v3995_v57  ;;  %v1918_v21 = vsub.f32 %v3902_v35, %v3995_v57  ;;  %v1920_v4 = vsub.f32 %v3920_v62, %v3995_v57 }
 0x960   : > { %v1922_v10 = vsub.f32 %v3948_v40, %v3995_v57  ;;  %v1924_v14 = vsub.f32 %v3957_v24, %v3995_v57  ;;  %v1894_v3 = vsub.f32 %v3636_v53, %v3995_v57  ;;  %v1896_v6 = vsub.f32 %v3651_v26, %v3995_v57 }
 0x961   : > { %v1926_v38 = vsub.f32 %v3972_v60, %v3995_v57  ;;  %v1898_v29 = vsub.f32 %v3671_v5, %v3995_v57  ;;  %v1900_v13 = vsub.f32 %v3684_v19, %v3995_v57  ;;  %v1902_v26 = vsub.f32 %v3709_v63, %v3995_v57 }
 0x962   : > { %v1958_v46 = vmul.f32 1.442695, %v1894_v3  ;;  %v1962_v0 = vmul.f32 1.442695, %v1896_v6  ;;  %v1904_v2 = vsub.f32 %v3724_v50, %v3995_v57  ;;  %v1892_v52 = vrot.slane %v1891_v47, 1 }
 0x963   : > { %v1966_v53 = vmul.f32 1.442695, %v1898_v29  ;;  %v1970_v25 = vmul.f32 1.442695, %v1900_v13  ;;  %v1974_v5 = vmul.f32 1.442695, %v1902_v26 }
 0x964   : > { %2883 = vpow2.f32 %v1958_v46  ;;  %v1978_v19 = vmul.f32 1.442695, %v1904_v2  ;;  %v1982_v42 = vmul.f32 1.442695, %v1906_v48  ;;  %v4049_v3 = vmax.f32 %v1891_v47, %v1892_v52 }
 0x965   : > { %2885 = vpow2.f32 %v1962_v0  ;;  %v1986_v6 = vmul.f32 1.442695, %v1908_v27  ;;  %v1990_v29 = vmul.f32 1.442695, %v1910_v45  ;;  %v1994_v49 = vmul.f32 1.442695, %v1912_v32 }
 0x966   : > { %2887 = vpow2.f32 %v1966_v53  ;;  %v1915_v50 = vsub.f32 %v3857_v30, %v4049_v3  ;;  %v1917_v13 = vsub.f32 %v3880_v16, %v4049_v3  ;;  %v1919_v52 = vsub.f32 %v3909_v22, %v4049_v3 }
 0x967   : > { %2889 = vpow2.f32 %v1970_v25  ;;  %v1921_v27 = vsub.f32 %v3931_v39, %v4049_v3  ;;  %v1923_v45 = vsub.f32 %v3951_v34, %v4049_v3  ;;  %v1925_v53 = vsub.f32 %v3963_v44, %v4049_v3 }
 0x968   : > { %2891 = vpow2.f32 %v1974_v5  ;;  %v1927_v32 = vsub.f32 %v3975_v61, %v4049_v3  ;;  %v1998_v5 = vmul.f32 1.442695, %v1914_v51  ;;  %v2002_v46 = vmul.f32 1.442695, %v1916_v15 }
 0x969   : > { %2893 = vpow2.f32 %v1978_v19  ;;  %v2010_v15 = vmul.f32 1.442695, %v1920_v4  ;;  %v2014_v35 = vmul.f32 1.442695, %v1922_v10  ;;  %v2018_v62 = vmul.f32 1.442695, %v1924_v14 }
 0x96a   : > { %2895 = vpow2.f32 %v1982_v42  ;;  %v1897_v4 = vsub.f32 %v3659_v1, %v4049_v3  ;;  %v2022_v40 = vmul.f32 1.442695, %v1926_v38  ;;  %v1899_v14 = vsub.f32 %v3675_v11, %v4049_v3 }
 0x96b   : > { %2897 = vpow2.f32 %v1986_v6  ;;  %v1932_v1 = vsub.f32 %v3653_v59, %v3995_v57  ;;  %v1901_v38 = vsub.f32 %v3693_v23, %v4049_v3  ;;  %v1903_v59 = vsub.f32 %v3714_v12, %v4049_v3 }
 0x96c   : > { %2899 = vpow2.f32 %v1990_v29 }
 0x96d   : > { %2901 = vpow2.f32 %v1994_v49 }
 0x96e   : > { %v4051_v63 = vpop.eup %2883  ;;  %2903 = vpow2.f32 %v1998_v5 }
 0x96f   : > { %v4053_v56 = vpop.eup %2885  ;;  %2905 = vpow2.f32 %v2002_v46  ;;  %v1930_v46 = vsub.f32 %v3638_v55, %v3995_v57 }
 0x970   : > { %v2086_v48 = vadd.f32 %v4053_v56, %v4051_v63  ;;  %v4065_v47 = vpop.eup %2887 }
 0x971   : > { %v4076_v2 = vpop.eup %2889 }
 0x972   : > { %v2087_v26 = vadd.f32 %v4065_v47, %v2086_v48  ;;  %v4079_v42 = vpop.eup %2891  ;;  %v2006_v48 = vmul.f32 1.442695, %v1918_v21 }
 0x973   : > { %v4082_v6 = vpop.eup %2893 }
 0x974   : > { %v2088_v19 = vadd.f32 %v4076_v2, %v2087_v26  ;;  %v4092_v26 = vpop.eup %2895  ;;  %2907 = vpow2.f32 %v2006_v48  ;;  %v4895_v48 = vsub.f32 %v3981_v17, %v3995_v57  ;;  %v1934_v17 = vsub.f32 %v3673_v7, %v3995_v57  ;;  %v4896_v7 = vld [vmem:[#allocation12_spill] sm:$0xff] }
 0x975   : > { %v4098_v5 = vpop.eup %2897  ;;  %2909 = vpow2.f32 %v2010_v15  ;;  %v1964_v15 = vmul.f32 1.442695, %v1897_v4 }
 0x976   : > { %v2089_v0 = vadd.f32 %v4079_v42, %v2088_v19  ;;  %v1895_v19 = vsub.f32 %v3640_v58, %v4049_v3  ;;  %2911 = vpow2.f32 %v2014_v35  ;;  %v2026_v24 = vmul.f32 1.442695, %v4895_v48 }
 0x977   : > { %2913 = vpow2.f32 %v2018_v62  ;;  %v2034_v62 = vmul.f32 1.442695, %v1932_v1  ;;  %v2038_v12 = vmul.f32 1.442695, %v1934_v17  ;;  %v4900_v17 = vld [vmem:[#allocation16_spill] sm:$0xff] }
 0x978   : > { %v2090_v29 = vadd.f32 %v4082_v6, %v2089_v0  ;;  %v4106_v0 = vpop.eup %2899  ;;  %2915 = vpow2.f32 %v2022_v40  ;;  %v1972_v40 = vmul.f32 1.442695, %v1901_v38 }
 0x979   : > { %v4119_v58 = vpop.eup %2901  ;;  %2917 = vpow2.f32 %v2026_v24 }
 0x97a   : > { %v2091_v49 = vadd.f32 %v4092_v26, %v2090_v29  ;;  %v1960_v29 = vmul.f32 1.442695, %v1895_v19  ;;  %v4129_v60 = vpop.eup %2903  ;;  %v1936_v19 = vsub.f32 %v3686_v20, %v3995_v57  ;;  %v4898_v20 = vld [vmem:[#allocation14_spill] sm:$0xff] }
 0x97b   : > { %v4136_v35 = vpop.eup %2905  ;;  %v1907_v1 = vsub.f32 %v4898_v20, %v4049_v3 }
 0x97c   : > { %v2092_v21 = vadd.f32 %v4098_v5, %v2091_v49  ;;  %v2030_v49 = vmul.f32 1.442695, %v1930_v46  ;;  %2919 = vpow2.f32 %v1960_v29  ;;  %v1905_v46 = vsub.f32 %v4896_v7, %v4049_v3  ;;  %v4899_v29 = vld [vmem:[#allocation11_spill] sm:$0xff] }
 0x97d   : > { %2921 = vpow2.f32 %v1964_v15  ;;  %v2042_v15 = vmul.f32 1.442695, %v1936_v19  ;;  %v1984_v19 = vmul.f32 1.442695, %v1907_v1 }
 0x97e   : > { %v2093_v10 = vadd.f32 %v4106_v0, %v2092_v21  ;;  %v1968_v21 = vmul.f32 1.442695, %v1899_v14  ;;  %v4143_v4 = vpop.eup %2907  ;;  %2923 = vpow2.f32 %v2030_v49  ;;  %v1909_v49 = vsub.f32 %v4900_v17, %v4049_v3 }
 0x97f   : > { %v4150_v14 = vpop.eup %2909 }
 0x980   : > { %v2094_v55 = vadd.f32 %v4119_v58, %v2093_v10  ;;  %v4897_v10 = vld [vmem:[#allocation9_spill] sm:$0xff]  ;;  %2925 = vpow2.f32 %v1968_v21  ;;  %v4157_v7 = vpop.eup %2911 }
 0x981   : > { %v1938_v48 = vsub.f32 %v4897_v10, %v3995_v57  ;;  %2927 = vpow2.f32 %v2034_v62  ;;  %v4162_v21 = vpop.eup %2913 }
 0x982   : > { %v2095_v11 = vadd.f32 %v4129_v60, %v2094_v55  ;;  %v1976_v55 = vmul.f32 1.442695, %v1903_v59  ;;  %2929 = vpow2.f32 %v1972_v40  ;;  %v4901_v59 = vld [vmem:[#allocation18_spill] sm:$0xff]  ;;  %v4166_v62 = vpop.eup %2915 }
 0x983   : > { %2931 = vpow2.f32 %v2038_v12  ;;  %v2046_v10 = vmul.f32 1.442695, %v1938_v48  ;;  %v4169_v17 = vpop.eup %2917  ;;  %v1988_v48 = vmul.f32 1.442695, %v1909_v49 }
 0x984   : > { %v2096_v23 = vadd.f32 %v4136_v35, %v2095_v11  ;;  %v1940_v11 = vsub.f32 %v4899_v29, %v3995_v57  ;;  %v1911_v29 = vsub.f32 %v4901_v59, %v4049_v3  ;;  %2933 = vpow2.f32 %v1976_v55 }
 0x985   : > { %2935 = vpow2.f32 %v2042_v15  ;;  %v4903_v55 = vsub.f32 %v3753_v8, %v3995_v57 }
 0x986   : > { %v2097_v24 = vadd.f32 %v4143_v4, %v2096_v23  ;;  %v1980_v23 = vmul.f32 1.442695, %v1905_v46  ;;  %v4902_v46 = vld [vmem:[#allocation20_spill] sm:$0xff]  ;;  %v4173_v12 = vpop.eup %2919 }
 0x987   : > { %v1913_v40 = vsub.f32 %v4902_v46, %v4049_v3  ;;  %v2054_v1 = vmul.f32 1.442695, %v4903_v55  ;;  %v4179_v15 = vpop.eup %2921 }
 0x988   : > { %v2098_v38 = vadd.f32 %v4150_v14, %v2097_v24  ;;  %v2050_v24 = vmul.f32 1.442695, %v1940_v11  ;;  %2937 = vpow2.f32 %v1980_v23  ;;  %v1992_v11 = vmul.f32 1.442695, %v1911_v29 }
 0x989   : > { %2939 = vpow2.f32 %v2046_v10  ;;  %v4904_v23 = vsub.f32 %v3769_v33, %v3995_v57  ;;  %v2123_v10 = vadd.f32 %v4179_v15, %v4173_v12  ;;  %v4905_v29 = vsub.f32 %v3801_v31, %v3995_v57 }
 0x98a   : > { %v2099_v20 = vadd.f32 %v4157_v7, %v2098_v38  ;;  %2941 = vpow2.f32 %v1984_v19 }
 0x98b   : > { %2943 = vpow2.f32 %v2050_v24  ;;  %v2058_v49 = vmul.f32 1.442695, %v4904_v23  ;;  %v2062_v19 = vmul.f32 1.442695, %v4905_v29 }
 0x98c   : > { %v2100_v51 = vadd.f32 %v4162_v21, %v2099_v20  ;;  %v4181_v20 = vpop.eup %2923  ;;  %2945 = vpow2.f32 %v1988_v48 }
 0x98d   : > { %v4189_v8 = vpop.eup %2925  ;;  %2947 = vpow2.f32 %v2054_v1 }
 0x98e   : > { %v2101_v38 = vadd.f32 %v4166_v62, %v2100_v51  ;;  %v1996_v51 = vmul.f32 1.442695, %v1913_v40  ;;  %v4191_v46 = vpop.eup %2927  ;;  %v2124_v33 = vadd.f32 %v4189_v8, %v2123_v10  ;;  %2949 = vpow2.f32 %v1992_v11 }
 0x98f   : > { %v4198_v55 = vpop.eup %2929  ;;  %2951 = vpow2.f32 %v2058_v49  ;;  %v4906_v40 = vsub.f32 %v3821_v36, %v3995_v57  ;;  %v2004_v11 = vmul.f32 1.442695, %v1917_v13  ;;  %v4908_v13 = vsub.f32 %v3871_v41, %v3995_v57 }
 0x990   : > { %v2102_v59 = vadd.f32 %v4169_v17, %v2101_v38  ;;  %v2000_v38 = vmul.f32 1.442695, %v1915_v50  ;;  %v4203_v48 = vpop.eup %2931  ;;  %v2125_v23 = vadd.f32 %v4198_v55, %v2124_v33  ;;  %2953 = vpow2.f32 %v1996_v51 }
 0x991   : > { %v2066_v1 = vmul.f32 1.442695, %v4906_v40  ;;  %2955 = vpow2.f32 %v2062_v19  ;;  %v4907_v50 = vsub.f32 %v3851_v54, %v3995_v57  ;;  %v2008_v51 = vmul.f32 1.442695, %v1919_v52 }
 0x992   : > { %v2103_v24 = vadd.f32 %v4181_v20, %v2102_v59  ;;  %v4210_v59 = vpop.eup %2933  ;;  %2957 = vpow2.f32 %v2000_v38  ;;  %v2074_v19 = vmul.f32 1.442695, %v4908_v13  ;;  %v2012_v38 = vmul.f32 1.442695, %v1921_v27 }
 0x993   : > { %v4215_v30 = vpop.eup %2935  ;;  %v2070_v49 = vmul.f32 1.442695, %v4907_v50  ;;  %v2126_v10 = vadd.f32 %v4210_v59, %v2125_v23  ;;  %2959 = vpow2.f32 %v2066_v1  ;;  %v4909_v52 = vsub.f32 %v3904_v28, %v3995_v57 }
 0x994   : > { %v2104_v31 = vadd.f32 %v4191_v46, %v2103_v24  ;;  %v4222_v29 = vpop.eup %2937  ;;  %2961 = vpow2.f32 %v2004_v11  ;;  %v2016_v23 = vmul.f32 1.442695, %v1923_v45  ;;  %v4910_v27 = vsub.f32 %v3922_v43, %v3995_v57  ;;  %v4913_v43 = vld [vmem:[#allocation5_spill] sm:$0xff] }
 0x995   : > { %v4227_v16 = vpop.eup %2939  ;;  %v2127_v24 = vadd.f32 %v4222_v29, %v2126_v10  ;;  %2963 = vpow2.f32 %v2070_v49  ;;  %v2078_v40 = vmul.f32 1.442695, %v4909_v52  ;;  %v2024_v13 = vmul.f32 1.442695, %v1927_v32 }
 0x996   : > { %v2105_v36 = vadd.f32 %v4203_v48, %v2104_v31  ;;  %v4234_v33 = vpop.eup %2941  ;;  %2965 = vpow2.f32 %v2008_v51  ;;  %v2082_v11 = vmul.f32 1.442695, %v4910_v27  ;;  %v1931_v51 = vsub.f32 %v4913_v43, %v4049_v3 }
 0x997   : > { %v4239_v22 = vpop.eup %2943  ;;  %v2128_v1 = vadd.f32 %v4234_v33, %v2127_v24  ;;  %2967 = vpow2.f32 %v2074_v19  ;;  %v4915_v24 = vld [vmem:[#allocation6_spill] sm:$0xff]  ;;  %v4916_v52 = vsub.f32 %v3987_v18, %v4049_v3 }
 0x998   : > { %v2106_v54 = vadd.f32 %v4215_v30, %v2105_v36  ;;  %v4246_v31 = vpop.eup %2945  ;;  %2969 = vpow2.f32 %v2012_v38  ;;  %v2020_v36 = vmul.f32 1.442695, %v1925_v53  ;;  %v1933_v38 = vsub.f32 %v4915_v24, %v4049_v3  ;;  %v4922_v24 = vld [vmem:[#allocation10_spill] sm:$0xff] }
 0x999   : > { %v4251_v39 = vpop.eup %2947  ;;  %v2129_v50 = vadd.f32 %v4246_v31, %v2128_v1  ;;  %2971 = vpow2.f32 %v2078_v40  ;;  %v2028_v40 = vmul.f32 1.442695, %v4916_v52  ;;  %v1939_v52 = vsub.f32 %v4922_v24, %v4049_v3  ;;  %v4926_v24 = vld [vmem:[#allocation15_spill] sm:$0xff] }
 0x99a   : > { %v2107_v41 = vadd.f32 %v4227_v16, %v2106_v54  ;;  %v4258_v49 = vpop.eup %2949  ;;  %2973 = vpow2.f32 %v2016_v23  ;;  %v4918_v23 = vld [vmem:[#allocation7_spill] sm:$0xff]  ;;  %v2036_v43 = vmul.f32 1.442695, %v1933_v38 }
 0x99b   : > { %4911 = vst [vmem:[#allocation12_spill] sm:$0xff] %v4258_v49  ;;  %v4263_v34 = vpop.eup %2951  ;;  %v2130_v10 = vadd.f32 %v4258_v49, %v2129_v50  ;;  %2975 = vpow2.f32 %v2082_v11  ;;  %v1935_v27 = vsub.f32 %v4918_v23, %v4049_v3  ;;  %v2032_v11 = vmul.f32 1.442695, %v1931_v51  ;;  %v4933_v49 = vld [vmem:[#allocation22_spill] sm:$0xff] }
 0x99c   : > { %v2108_v28 = vadd.f32 %v4239_v22, %v2107_v41  ;;  %v4267_v57 = vpop.eup %2953  ;;  %2977 = vpow2.f32 %v2020_v36 }
 0x99d   : > { %4912 = vst [vmem:[#allocation9_spill] sm:$0xff] %v4267_v57  ;;  %v4274_v19 = vpop.eup %2955  ;;  %v2131_v53 = vadd.f32 %v4267_v57, %v2130_v10  ;;  %2979 = vpow2.f32 %v2024_v13  ;;  %v4932_v57 = vld [vmem:[#allocation21_spill] sm:$0xff] }
 0x99e   : > { %v2109_v45 = vadd.f32 %v4251_v39, %v2108_v28  ;;  %v4278_v54 = vpop.eup %2957  ;;  %2981 = vpow2.f32 %v2028_v40 }
 0x99f   : > { %4914 = vst [vmem:[#allocation14_spill] sm:$0xff] %v4278_v54  ;;  %v4285_v41 = vpop.eup %2959  ;;  %v2132_v32 = vadd.f32 %v4278_v54, %v2131_v53  ;;  %2983 = vpow2.f32 %v2032_v11 }
 0x9a0   : > { %v2110_v44 = vadd.f32 %v4263_v34, %v2109_v45  ;;  %v4289_v1 = vpop.eup %2961  ;;  %v4920_v45 = vld [vmem:[#allocation8_spill] sm:$0xff]  ;;  %2985 = vpow2.f32 %v2036_v43 }
 0x9a1   : > { %4917 = vst [vmem:[#allocation11_spill] sm:$0xff] %v4289_v1  ;;  %v4293_v28 = vpop.eup %2963  ;;  %v2133_v18 = vadd.f32 %v4289_v1, %v2132_v32  ;;  %v1937_v10 = vsub.f32 %v4920_v45, %v4049_v3  ;;  %v4924_v45 = vld [vmem:[#allocation13_spill] sm:$0xff] }
 0x9a2   : > { %v2111_v61 = vadd.f32 %v4274_v19, %v2110_v44  ;;  %v4297_v36 = vpop.eup %2965 }
 0x9a3   : > { %4919 = vst [vmem:[#allocation16_spill] sm:$0xff] %v4297_v36  ;;  %v4301_v44 = vpop.eup %2967  ;;  %v2134_v13 = vadd.f32 %v4297_v36, %v2133_v18  ;;  %v2044_v18 = vmul.f32 1.442695, %v1937_v10  ;;  %v4928_v10 = vld [vmem:[#allocation17_spill] sm:$0xff] }
 0x9a4   : > { %v2112_v50 = vadd.f32 %v4285_v41, %v2111_v61  ;;  %v4305_v51 = vpop.eup %2969  ;;  %v2040_v61 = vmul.f32 1.442695, %v1935_v27  ;;  %v1945_v43 = vsub.f32 %v4928_v10, %v4049_v3  ;;  %v1949_v10 = vsub.f32 %v4932_v57, %v4049_v3 }
 0x9a5   : > { %4921 = vst [vmem:[#allocation18_spill] sm:$0xff] %v4305_v51  ;;  %v4309_v32 = vpop.eup %2971  ;;  %v2135_v40 = vadd.f32 %v4305_v51, %v2134_v13  ;;  %v2048_v13 = vmul.f32 1.442695, %v1939_v52 }
 0x9a6   : > { %v2113_v53 = vadd.f32 %v4293_v28, %v2112_v50  ;;  %v4313_v38 = vpop.eup %2973  ;;  %v1941_v50 = vsub.f32 %v4924_v45, %v4049_v3  ;;  %2987 = vpow2.f32 %v2040_v61 }
 0x9a7   : > { %4923 = vst [vmem:[#allocation20_spill] sm:$0xff] %v4313_v38  ;;  %v4317_v25 = vpop.eup %2975  ;;  %v2136_v11 = vadd.f32 %v4313_v38, %v2135_v40  ;;  %2989 = vpow2.f32 %v2044_v18 }
 0x9a8   : > { %v2114_v23 = vadd.f32 %v4301_v44, %v2113_v53  ;;  %v4321_v27 = vpop.eup %2977  ;;  %v1943_v53 = vsub.f32 %v4926_v24, %v4049_v3  ;;  %v4930_v24 = vld [vmem:[#allocation19_spill] sm:$0xff]  ;;  %2991 = vpow2.f32 %v2048_v13 }
 0x9a9   : > { %4925 = vst [vmem:[#allocation5_spill] sm:$0xff] %v4321_v27  ;;  %v2137_v1 = vadd.f32 %v4321_v27, %v2136_v11  ;;  %v4327_v45 = vpop.eup %2979  ;;  %v1947_v61 = vsub.f32 %v4930_v24, %v4049_v3  ;;  %v1951_v24 = vsub.f32 %v4933_v49, %v4049_v3 }
 0x9aa   : > { %v2115_v36 = vadd.f32 %v4309_v32, %v2114_v23  ;;  %4927 = vst [vmem:[#allocation6_spill] sm:$0xff] %v4327_v45  ;;  %v2052_v23 = vmul.f32 1.442695, %v1941_v50  ;;  %v4332_v38 = vpop.eup %2981  ;;  %v2056_v52 = vmul.f32 1.442695, %v1943_v53 }
 0x9ab   : > { %v2138_v40 = vadd.f32 %v4327_v45, %v2137_v1  ;;  %4929 = vst [vmem:[#allocation7_spill] sm:$0xff] %v4332_v38  ;;  %v4337_v27 = vpop.eup %2983  ;;  %v2060_v50 = vmul.f32 1.442695, %v1945_v43  ;;  %v2064_v53 = vmul.f32 1.442695, %v1947_v61 }
 0x9ac   : > { %v2116_v51 = vadd.f32 %v4317_v25, %v2115_v36  ;;  %4931 = vst [vmem:[#allocation8_spill] sm:$0xff] %v4337_v27  ;;  %2993 = vpow2.f32 %v2052_v23  ;;  %v4342_v45 = vpop.eup %2985  ;;  %v2068_v43 = vmul.f32 1.442695, %v1949_v10  ;;  %v4935_v10 = vsub.f32 %v3911_v9, %v4049_v3 }
 0x9ad   : > { %v2139_v11 = vadd.f32 %v4332_v38, %v2138_v40  ;;  %2995 = vpow2.f32 %v2056_v52  ;;  %v4934_v40 = vld [vmem:[#allocation23_spill] sm:$0xff]  ;;  %v2072_v38 = vmul.f32 1.442695, %v1951_v24 }
 0x9ae   : > { %v2117_v54 = vrot.slane %v2116_v51, 4  ;;  %v1953_v57 = vsub.f32 %v4934_v40, %v4049_v3  ;;  %2997 = vpow2.f32 %v2060_v50  ;;  %v2080_v50 = vmul.f32 1.442695, %v4935_v10 }
 0x9af   : > { %v2140_v1 = vadd.f32 %v4337_v27, %v2139_v11  ;;  %2999 = vpow2.f32 %v2064_v53 }
 0x9b0   : > { %v2118_v36 = vadd.f32 %v2117_v54, %v2116_v51  ;;  %v4347_v13 = vpop.eup %2987  ;;  %3001 = vpow2.f32 %v2068_v43 }
 0x9b1   : > { %v2141_v51 = vadd.f32 %v4342_v45, %v2140_v1  ;;  %v4352_v27 = vpop.eup %2989 }
 0x9b2   : > { %v2119_v18 = vrot.slane %v2118_v36, 2  ;;  %v4355_v52 = vpop.eup %2991 }
 0x9b3   : > { %v2142_v11 = vadd.f32 %v4347_v13, %v2141_v51 }
 0x9b4   : > { %v2120_v54 = vadd.f32 %v2119_v18, %v2118_v36  ;;  %v2076_v36 = vmul.f32 1.442695, %v1953_v57 }
 0x9b5   : > { %v2143_v61 = vadd.f32 %v4352_v27, %v2142_v11 }
 0x9b6   : > { %v2121_v23 = vrot.slane %v2120_v54, 1  ;;  %v4358_v1 = vpop.eup %2993 }
 0x9b7   : > { %v2144_v18 = vadd.f32 %v4355_v52, %v2143_v61  ;;  %v4364_v24 = vpop.eup %2995 }
 0x9b8   : > { %v2122_v49 = vadd.f32 %v2121_v23, %v2120_v54  ;;  %v4367_v51 = vpop.eup %2997  ;;  %v4937_v23 = vsub.f32 %v3933_v37, %v4049_v3 }
 0x9b9   : > { %v2145_v53 = vadd.f32 %v4358_v1, %v2144_v18  ;;  %v4370_v57 = vpop.eup %2999 }
 0x9ba   : > { %3003 = vrcp.f32 %v2122_v49  ;;  %4936 = vst [vmem:[#allocation10_spill] sm:$0xff] %v4370_v57  ;;  %v4373_v43 = vpop.eup %3001  ;;  %v2084_v11 = vmul.f32 1.442695, %v4937_v23 }
 0x9bb   : > { %3005 = vpow2.f32 %v2072_v38  ;;  %v2146_v54 = vadd.f32 %v4364_v24, %v2145_v53 }
 0x9bc   : > { %3007 = vpow2.f32 %v2076_v36 }
 0x9bd   : > { %3009 = vpow2.f32 %v2080_v50  ;;  %v2147_v40 = vadd.f32 %v4367_v51, %v2146_v54 }
 0x9be   : > { %3011 = vpow2.f32 %v2084_v11 }
 0x9bf   : > { %v2148_v38 = vadd.f32 %v4370_v57, %v2147_v40 }
 0x9c1   : > { %v2149_v61 = vadd.f32 %v4373_v43, %v2148_v38 }
 0x9c4   : > { %v3004_v9 = vpop.eup %3003 }
 0x9c5   : > { %v4379_v36 = vpop.eup %3005  ;;  %v2162_v18 = vmul.f32 %v3004_v9, %v2122_v49 }
 0x9c6   : > { %v2150_v10 = vadd.f32 %v4379_v36, %v2149_v61  ;;  %v4382_v50 = vpop.eup %3007 }
 0x9c7   : > { %v2164_v53 = vsub.f32 2.0, %v2162_v18  ;;  %v4385_v40 = vpop.eup %3009 }
 0x9c8   : > { %v2151_v54 = vadd.f32 %v4382_v50, %v2150_v10 }
 0x9c9   : > { %v2166_v57 = vmul.f32 %v3004_v9, %v2164_v53 }
 0x9ca   : > { %v4388_v37 = vadd.f32 %v4385_v40, %v2151_v54 }
 0x9cb   : > { %v2168_v3 = vmul.f32 %v4051_v63, %v2166_v57  ;;  %v2170_v38 = vmul.f32 %v4053_v56, %v2166_v57  ;;  %v2172_v49 = vmul.f32 %v4065_v47, %v2166_v57  ;;  %v2174_v23 = vmul.f32 %v4076_v2, %v2166_v57 }
 0x9cc   : > { %v2176_v61 = vmul.f32 %v4079_v42, %v2166_v57  ;;  %v2178_v11 = vmul.f32 %v4082_v6, %v2166_v57  ;;  %v2180_v18 = vmul.f32 %v4092_v26, %v2166_v57  ;;  %v2182_v10 = vmul.f32 %v4098_v5, %v2166_v57 }
 0x9cd   : > { %v2184_v9 = vmul.f32 %v4106_v0, %v2166_v57  ;;  %v2186_v53 = vmul.f32 %v4119_v58, %v2166_v57  ;;  %v2188_v63 = vmul.f32 %v4129_v60, %v2166_v57  ;;  %v2190_v56 = vmul.f32 %v4136_v35, %v2166_v57  ;;  %2232 = vst [vmem:[%s4403_s28] sm:$0xff] %v2168_v3 }
 0x9ce   : > { %2234 = vst [vmem:[%s4403_s28 + $0x10] sm:$0xff] %v2170_v38  ;;  %2236 = vst [vmem:[%s4403_s28 + $0x20] sm:$0xff] %v2172_v49  ;;  %v2192_v47 = vmul.f32 %v4143_v4, %v2166_v57  ;;  %v2194_v2 = vmul.f32 %v4150_v14, %v2166_v57  ;;  %v2196_v42 = vmul.f32 %v4157_v7, %v2166_v57 }
 0x9cf   : > { %2238 = vst [vmem:[%s4403_s28 + $0x30] sm:$0xff] %v2174_v23  ;;  %v2198_v6 = vmul.f32 %v4162_v21, %v2166_v57  ;;  %2240 = vst [vmem:[%s4403_s28 + $0x40] sm:$0xff] %v2176_v61  ;;  %v2200_v26 = vmul.f32 %v4166_v62, %v2166_v57  ;;  %v2202_v5 = vmul.f32 %v4169_v17, %v2166_v57 }
 0x9d0   : > { %2242 = vst [vmem:[%s4403_s28 + $0x50] sm:$0xff] %v2178_v11  ;;  %2244 = vst [vmem:[%s4403_s28 + $0x60] sm:$0xff] %v2180_v18  ;;  %v2204_v0 = vmul.f32 %v4181_v20, %v2166_v57  ;;  %v2206_v58 = vmul.f32 %v4191_v46, %v2166_v57  ;;  %v2208_v60 = vmul.f32 %v4203_v48, %v2166_v57  ;;  %v4441_v20 = vpop.eup %3011 }
 0x9d1   : > { %2246 = vst [vmem:[%s4403_s28 + $0x70] sm:$0xff] %v2182_v10  ;;  %2248 = vst [vmem:[%s4403_s28 + $0x80] sm:$0xff] %v2184_v9  ;;  %v2210_v35 = vmul.f32 %v4215_v30, %v2166_v57  ;;  %v2212_v4 = vmul.f32 %v4227_v16, %v2166_v57  ;;  %v2214_v14 = vmul.f32 %v4239_v22, %v2166_v57  ;;  %v4938_v10 = vld [vmem:[#allocation12_spill] sm:$0xff]  ;;  %v4939_v9 = vld [vmem:[#allocation9_spill] sm:$0xff] }
 0x9d2   : > { %2250 = vst [vmem:[%s4403_s28 + $0x90] sm:$0xff] %v2186_v53  ;;  %2252 = vst [vmem:[%s4403_s28 + $0xa0] sm:$0xff] %v2188_v63  ;;  %v2216_v7 = vmul.f32 %v4251_v39, %v2166_v57  ;;  %v2218_v21 = vmul.f32 %v4263_v34, %v2166_v57  ;;  %v2220_v62 = vmul.f32 %v4274_v19, %v2166_v57  ;;  %v4940_v53 = vld [vmem:[#allocation14_spill] sm:$0xff]  ;;  %v4941_v63 = vld [vmem:[#allocation11_spill] sm:$0xff] }
 0x9d3   : > { %2254 = vst [vmem:[%s4403_s28 + $0xb0] sm:$0xff] %v2190_v56  ;;  %2256 = vst [vmem:[%s4403_s28 + $0xc0] sm:$0xff] %v2192_v47  ;;  %v2222_v17 = vmul.f32 %v4285_v41, %v2166_v57  ;;  %v2224_v46 = vmul.f32 %v4293_v28, %v2166_v57  ;;  %v2226_v48 = vmul.f32 %v4301_v44, %v2166_v57  ;;  %v4944_v56 = vld [vmem:[#allocation20_spill] sm:$0xff] }
 0x9d4   : > { %2258 = vst [vmem:[%s4403_s28 + $0xd0] sm:$0xff] %v2194_v2  ;;  %2260 = vst [vmem:[%s4403_s28 + $0xe0] sm:$0xff] %v2196_v42  ;;  %v2228_v30 = vmul.f32 %v4309_v32, %v2166_v57  ;;  %v2230_v16 = vmul.f32 %v4317_v25, %v2166_v57  ;;  %v2153_v22 = vadd.f32 %v4441_v20, %v4388_v37  ;;  %v4945_v2 = vld [vmem:[#allocation5_spill] sm:$0xff] }
 0x9d5   : > { %2262 = vst [vmem:[%s4403_s28 + $0xf0] sm:$0xff] %v2198_v6  ;;  %2264 = vst [vmem:[%s4403_s28 + $0x100] sm:$0xff] %v2200_v26  ;;  %v4946_v6 = vld [vmem:[#allocation6_spill] sm:$0xff] }
 0x9d6   : > { %2266 = vst [vmem:[%s4403_s28 + $0x110] sm:$0xff] %v2202_v5  ;;  %2268 = vst [vmem:[%s4403_s28 + $0x120] sm:$0xff] %v2204_v0  ;;  %v2154_v39 = vrot.slane %v2153_v22, 4  ;;  %v4947_v5 = vld [vmem:[#allocation7_spill] sm:$0xff] }
 0x9d7   : > { %2270 = vst [vmem:[%s4403_s28 + $0x130] sm:$0xff] %v2206_v58  ;;  %2272 = vst [vmem:[%s4403_s28 + $0x140] sm:$0xff] %v2208_v60  ;;  %v4948_v58 = vld [vmem:[#allocation8_spill] sm:$0xff] }
 0x9d8   : > { %2274 = vst [vmem:[%s4403_s28 + $0x150] sm:$0xff] %v2210_v35  ;;  %2276 = vst [vmem:[%s4403_s28 + $0x160] sm:$0xff] %v2212_v4  ;;  %v2155_v34 = vadd.f32 %v2154_v39, %v2153_v22  ;;  %v2340_v22 = vld [vmem:[%s3645_s29 + $0x48] sm:$0xff] (%p3151_p5)  ;;  %v2342_v39 = vld [vmem:[%s3645_s29 + $0x50] sm:$0xff] (%p3151_p5) }
 0x9d9   : > { %2278 = vst [vmem:[%s4403_s28 + $0x170] sm:$0xff] %v2214_v14  ;;  %2280 = vst [vmem:[%s4403_s28 + $0x180] sm:$0xff] %v2216_v7 }
 0x9da   : > { %2282 = vst [vmem:[%s4403_s28 + $0x190] sm:$0xff] %v2218_v21  ;;  %2284 = vst [vmem:[%s4403_s28 + $0x1a0] sm:$0xff] %v2220_v62  ;;  %v2156_v19 = vrot.slane %v2155_v34, 2 }
 0x9db   : > { %2286 = vst [vmem:[%s4403_s28 + $0x1b0] sm:$0xff] %v2222_v17  ;;  %2288 = vst [vmem:[%s4403_s28 + $0x1c0] sm:$0xff] %v2224_v46  ;;  %v2332_v46 = vld [vmem:[%s3645_s29 + $0x28] sm:$0xff] (%p3151_p5) }
 0x9dc   : > { %2290 = vst [vmem:[%s4403_s28 + $0x1d0] sm:$0xff] %v2226_v48  ;;  %2292 = vst [vmem:[%s4403_s28 + $0x1e0] sm:$0xff] %v2228_v30  ;;  %v2157_v41 = vadd.f32 %v2156_v19, %v2155_v34  ;;  %v2334_v48 = vld [vmem:[%s3645_s29 + $0x30] sm:$0xff] (%p3151_p5)  ;;  %v2336_v30 = vld [vmem:[%s3645_s29 + $0x38] sm:$0xff] (%p3151_p5) }
 0x9dd   : > { %2294 = vst [vmem:[%s4403_s28 + $0x1f0] sm:$0xff] %v2230_v16  ;;  %2333 = vst [vmem:[%s4534_s25 + $0x48] sm:$0xff] (%p3151_p5), %v2332_v46  ;;  %v2338_v16 = vld [vmem:[%s3645_s29 + $0x40] sm:$0xff] (%p3151_p5)  ;;  %v2344_v34 = vld [vmem:[%s3645_s29 + $0x58] sm:$0xff] (%p3151_p5) }
 0x9de   : > { %v2158_v25 = vrot.slane %v2157_v41, 1  ;;  %2335 = vst [vmem:[%s4534_s25 + $0x60] sm:$0xff] (%p3151_p5), %v2334_v48  ;;  %2337 = vst [vmem:[%s4534_s25 + $0x68] sm:$0xff] (%p3151_p5), %v2336_v30  ;;  %v2346_v19 = vld [vmem:[%s3645_s29 + $0x60] sm:$0xff] (%p3151_p5) }
 0x9df   : > { %2339 = vst [vmem:[%s4534_s25 + $0x80] sm:$0xff] (%p3151_p5), %v2338_v16  ;;  %2341 = vst [vmem:[%s4534_s25 + $0x88] sm:$0xff] (%p3151_p5), %v2340_v22 }
 0x9e0   : > { %v2159_v28 = vadd.f32 %v2158_v25, %v2157_v41  ;;  %2343 = vst [vmem:[%s4534_s25 + $0xa0] sm:$0xff] (%p3151_p5), %v2342_v39  ;;  %2345 = vst [vmem:[%s4534_s25 + $0xa8] sm:$0xff] (%p3151_p5), %v2344_v34  ;;  %v2348_v41 = vld [vmem:[%s3645_s29 + $0x68] sm:$0xff] (%p3151_p5)  ;;  %v2350_v25 = vld [vmem:[%s3645_s29 + $0x70] sm:$0xff] (%p3151_p5) }
 0x9e1   : > { %2347 = vst [vmem:[%s4534_s25 + $0xc0] sm:$0xff] (%p3151_p5), %v2346_v19  ;;  %2349 = vst [vmem:[%s4534_s25 + $0xc8] sm:$0xff] (%p3151_p5), %v2348_v41 }
 0x9e2   : > { %3013 = vrcp.f32 %v2159_v28  ;;  %2351 = vst [vmem:[%s4534_s25 + $0xe0] sm:$0xff] (%p3151_p5), %v2350_v25 }
 0x9ec   : > { %v3014_v44 = vpop.eup %3013 }
 0x9ed   : > { %v2163_v32 = vmul.f32 %v3014_v44, %v2159_v28  ;;  %v2352_v28 = vld [vmem:[%s3645_s29 + $0x78] sm:$0xff] (%p3151_p5) }
 0x9ee   : > { %2353 = vst [vmem:[%s4534_s25 + $0xe8] sm:$0xff] (%p3151_p5), %v2352_v28 }
 0x9ef   : > { %v2165_v57 = vsub.f32 2.0, %v2163_v32  ;;  %v2356_v32 = vld [vmem:[%s3645_s29 + $0x88] sm:$0xff] (%p3151_p5) }
 0x9f0   : > { %2357 = vst [vmem:[%s4534_s25 + $0x108] sm:$0xff] (%p3151_p5), %v2356_v32 }
 0x9f1   : > { %v2167_v54 = vmul.f32 %v3014_v44, %v2165_v57  ;;  %v2354_v44 = vld [vmem:[%s3645_s29 + $0x80] sm:$0xff] (%p3151_p5)  ;;  %v2358_v57 = vld [vmem:[%s3645_s29 + $0x90] sm:$0xff] (%p3151_p5) }
 0x9f2   : > { %2355 = vst [vmem:[%s4534_s25 + $0x100] sm:$0xff] (%p3151_p5), %v2354_v44  ;;  %2359 = vst [vmem:[%s4534_s25 + $0x120] sm:$0xff] (%p3151_p5), %v2358_v57 }
 0x9f3   : > { %v2169_v37 = vmul.f32 %v4173_v12, %v2167_v54  ;;  %v2171_v3 = vmul.f32 %v4179_v15, %v2167_v54  ;;  %v2173_v38 = vmul.f32 %v4189_v8, %v2167_v54  ;;  %v2175_v49 = vmul.f32 %v4198_v55, %v2167_v54 }
 0x9f4   : > { %v2177_v23 = vmul.f32 %v4210_v59, %v2167_v54  ;;  %v2179_v61 = vmul.f32 %v4222_v29, %v2167_v54  ;;  %v2181_v11 = vmul.f32 %v4234_v33, %v2167_v54  ;;  %v2183_v18 = vmul.f32 %v4246_v31, %v2167_v54  ;;  %v4942_v59 = vld [vmem:[#allocation16_spill] sm:$0xff]  ;;  %v4943_v33 = vld [vmem:[#allocation18_spill] sm:$0xff] }
 0x9f5   : > { %v2185_v12 = vmul.f32 %v4938_v10, %v2167_v54  ;;  %v2187_v15 = vmul.f32 %v4939_v9, %v2167_v54  ;;  %v2189_v8 = vmul.f32 %v4940_v53, %v2167_v54  ;;  %v2191_v55 = vmul.f32 %v4941_v63, %v2167_v54  ;;  %2233 = vst [vmem:[%s4403_s28 + $0x8] sm:$0xff] %v2169_v37  ;;  %v2362_v37 = vld [vmem:[%s3645_s29 + $0xa0] sm:$0xff] (%p3151_p5)  ;;  %v2382_v9 = vld [vmem:[%s3645_s29 + $0xf0] sm:$0xff] (%p3151_p5) }
 0x9f6   : > { %2235 = vst [vmem:[%s4403_s28 + $0x18] sm:$0xff] %v2171_v3  ;;  %2237 = vst [vmem:[%s4403_s28 + $0x28] sm:$0xff] %v2173_v38  ;;  %v2193_v29 = vmul.f32 %v4942_v59, %v2167_v54  ;;  %v2195_v31 = vmul.f32 %v4943_v33, %v2167_v54  ;;  %v2197_v47 = vmul.f32 %v4944_v56, %v2167_v54  ;;  %v2364_v3 = vld [vmem:[%s3645_s29 + $0xa8] sm:$0xff] (%p3151_p5)  ;;  %v2366_v38 = vld [vmem:[%s3645_s29 + $0xb0] sm:$0xff] (%p3151_p5) }
 0x9f7   : > { %2239 = vst [vmem:[%s4403_s28 + $0x38] sm:$0xff] %v2175_v49  ;;  %v2199_v42 = vmul.f32 %v4945_v2, %v2167_v54  ;;  %2241 = vst [vmem:[%s4403_s28 + $0x48] sm:$0xff] %v2177_v23  ;;  %v2201_v26 = vmul.f32 %v4946_v6, %v2167_v54  ;;  %v2203_v0 = vmul.f32 %v4947_v5, %v2167_v54  ;;  %v2368_v49 = vld [vmem:[%s3645_s29 + $0xb8] sm:$0xff] (%p3151_p5)  ;;  %v2370_v23 = vld [vmem:[%s3645_s29 + $0xc0] sm:$0xff] (%p3151_p5) }
 0x9f8   : > { %2243 = vst [vmem:[%s4403_s28 + $0x58] sm:$0xff] %v2179_v61  ;;  %2245 = vst [vmem:[%s4403_s28 + $0x68] sm:$0xff] %v2181_v11  ;;  %v2205_v60 = vmul.f32 %v4948_v58, %v2167_v54  ;;  %v2207_v35 = vmul.f32 %v4342_v45, %v2167_v54  ;;  %v2209_v4 = vmul.f32 %v4347_v13, %v2167_v54  ;;  %v4949_v13 = vld [vmem:[#allocation10_spill] sm:$0xff]  ;;  %v2374_v11 = vld [vmem:[%s3645_s29 + $0xd0] sm:$0xff] (%p3151_p5) }
 0x9f9   : > { %2247 = vst [vmem:[%s4403_s28 + $0x78] sm:$0xff] %v2183_v18  ;;  %2249 = vst [vmem:[%s4403_s28 + $0x88] sm:$0xff] %v2185_v12  ;;  %v2211_v14 = vmul.f32 %v4352_v27, %v2167_v54  ;;  %v2213_v7 = vmul.f32 %v4355_v52, %v2167_v54  ;;  %v2215_v21 = vmul.f32 %v4358_v1, %v2167_v54  ;;  %v2372_v61 = vld [vmem:[%s3645_s29 + $0xc8] sm:$0xff] (%p3151_p5)  ;;  %v2376_v18 = vld [vmem:[%s3645_s29 + $0xd8] sm:$0xff] (%p3151_p5) }
 0x9fa   : > { %2251 = vst [vmem:[%s4403_s28 + $0x98] sm:$0xff] %v2187_v15  ;;  %2253 = vst [vmem:[%s4403_s28 + $0xa8] sm:$0xff] %v2189_v8  ;;  %v2217_v45 = vmul.f32 %v4364_v24, %v2167_v54  ;;  %v2219_v62 = vmul.f32 %v4367_v51, %v2167_v54  ;;  %v2221_v27 = vmul.f32 %v4949_v13, %v2167_v54  ;;  %v2378_v10 = vld [vmem:[%s3645_s29 + $0xe0] sm:$0xff] (%p3151_p5)  ;;  %v2380_v12 = vld [vmem:[%s3645_s29 + $0xe8] sm:$0xff] (%p3151_p5) }
 0x9fb   : > { %2255 = vst [vmem:[%s4403_s28 + $0xb8] sm:$0xff] %v2191_v55  ;;  %2257 = vst [vmem:[%s4403_s28 + $0xc8] sm:$0xff] %v2193_v29  ;;  %v2223_v52 = vmul.f32 %v4373_v43, %v2167_v54  ;;  %v2225_v1 = vmul.f32 %v4379_v36, %v2167_v54  ;;  %v2227_v24 = vmul.f32 %v4382_v50, %v2167_v54  ;;  %v2322_v43 = vld [vmem:[%s3645_s29] sm:$0xff] (%p3151_p5)  ;;  %v2324_v36 = vld [vmem:[%s3645_s29 + $0x8] sm:$0xff] (%p3151_p5) }
 0x9fc   : > { %2259 = vst [vmem:[%s4403_s28 + $0xd8] sm:$0xff] %v2195_v31  ;;  %2261 = vst [vmem:[%s4403_s28 + $0xe8] sm:$0xff] %v2197_v47  ;;  %v2229_v51 = vmul.f32 %v4385_v40, %v2167_v54  ;;  %v2231_v17 = vmul.f32 %v4441_v20, %v2167_v54  ;;  %v2326_v50 = vld [vmem:[%s3645_s29 + $0x10] sm:$0xff] (%p3151_p5)  ;;  %v2328_v40 = vld [vmem:[%s3645_s29 + $0x18] sm:$0xff] (%p3151_p5) }
 0x9fd   : > { %2263 = vst [vmem:[%s4403_s28 + $0xf8] sm:$0xff] %v2199_v42  ;;  %2265 = vst [vmem:[%s4403_s28 + $0x108] sm:$0xff] %v2201_v26  ;;  %v2330_v20 = vld [vmem:[%s3645_s29 + $0x20] sm:$0xff] (%p3151_p5)  ;;  %v2360_v54 = vld [vmem:[%s3645_s29 + $0x98] sm:$0xff] (%p3151_p5) }
 0x9fe   : > { %2267 = vst [vmem:[%s4403_s28 + $0x118] sm:$0xff] %v2203_v0  ;;  %2269 = vst [vmem:[%s4403_s28 + $0x128] sm:$0xff] %v2205_v60  ;;  %v2384_v15 = vld [vmem:[%s3645_s29 + $0xf8] sm:$0xff] (%p3151_p5)  ;;  %v2386_v53 = vld [vmem:[%s3645_s29 + $0x100] sm:$0xff] (%p3151_p5) }
 0x9ff   : > { %2271 = vst [vmem:[%s4403_s28 + $0x138] sm:$0xff] %v2207_v35  ;;  %2273 = vst [vmem:[%s4403_s28 + $0x148] sm:$0xff] %v2209_v4  ;;  %2306 = sbr.rel (!%p3151_p5) target bundleno = 2591 (0xa1f), region = 99  ;;  %v2388_v8 = vld [vmem:[%s3645_s29 + $0x108] sm:$0xff] (%p3151_p5)  ;;  %v2390_v63 = vld [vmem:[%s3645_s29 + $0x110] sm:$0xff] (%p3151_p5) }
 0xa00   : > { %2275 = vst [vmem:[%s4403_s28 + $0x158] sm:$0xff] %v2211_v14  ;;  %2277 = vst [vmem:[%s4403_s28 + $0x168] sm:$0xff] %v2213_v7  ;;  %v2392_v55 = vld [vmem:[%s3645_s29 + $0x118] sm:$0xff] (%p3151_p5)  ;;  %v2394_v59 = vld [vmem:[%s3645_s29 + $0x120] sm:$0xff] (%p3151_p5) }
 0xa01   : > { %2279 = vst [vmem:[%s4403_s28 + $0x178] sm:$0xff] %v2215_v21  ;;  %2281 = vst [vmem:[%s4403_s28 + $0x188] sm:$0xff] %v2217_v45  ;;  %v2396_v29 = vld [vmem:[%s3645_s29 + $0x128] sm:$0xff] (%p3151_p5)  ;;  %v2398_v33 = vld [vmem:[%s3645_s29 + $0x130] sm:$0xff] (%p3151_p5) }
 0xa02   : > { %2283 = vst [vmem:[%s4403_s28 + $0x198] sm:$0xff] %v2219_v62  ;;  %2285 = vst [vmem:[%s4403_s28 + $0x1a8] sm:$0xff] %v2221_v27  ;;  %v2400_v31 = vld [vmem:[%s3645_s29 + $0x138] sm:$0xff] (%p3151_p5)  ;;  %v2402_v56 = vld [vmem:[%s3645_s29 + $0x140] sm:$0xff] (%p3151_p5) }
 0xa03   : > { %2287 = vst [vmem:[%s4403_s28 + $0x1b8] sm:$0xff] %v2223_v52  ;;  %2289 = vst [vmem:[%s4403_s28 + $0x1c8] sm:$0xff] %v2225_v1  ;;  %v2404_v47 = vld [vmem:[%s3645_s29 + $0x148] sm:$0xff] (%p3151_p5)  ;;  %v2406_v2 = vld [vmem:[%s3645_s29 + $0x150] sm:$0xff] (%p3151_p5) }
 0xa04   : > { %2291 = vst [vmem:[%s4403_s28 + $0x1d8] sm:$0xff] %v2227_v24  ;;  %2293 = vst [vmem:[%s4403_s28 + $0x1e8] sm:$0xff] %v2229_v51  ;;  %v2408_v42 = vld [vmem:[%s3645_s29 + $0x158] sm:$0xff] (%p3151_p5)  ;;  %v2410_v6 = vld [vmem:[%s3645_s29 + $0x160] sm:$0xff] (%p3151_p5) }
 0xa05   : > { %2295 = vst [vmem:[%s4403_s28 + $0x1f8] sm:$0xff] %v2231_v17  ;;  %2323 = vst [vmem:[%s4534_s25] sm:$0xff] (%p3151_p5), %v2322_v43  ;;  %v2412_v26 = vld [vmem:[%s3645_s29 + $0x168] sm:$0xff] (%p3151_p5)  ;;  %v2414_v5 = vld [vmem:[%s3645_s29 + $0x170] sm:$0xff] (%p3151_p5) }
 0xa06   : > { %2325 = vst [vmem:[%s4534_s25 + $0x8] sm:$0xff] %v2324_v36  ;;  %2327 = vst [vmem:[%s4534_s25 + $0x20] sm:$0xff] %v2326_v50  ;;  %v2416_v0 = vld [vmem:[%s3645_s29 + $0x178] sm:$0xff]  ;;  %v2418_v58 = vld [vmem:[%s3645_s29 + $0x180] sm:$0xff] }
 0xa07   : > { %2329 = vst [vmem:[%s4534_s25 + $0x28] sm:$0xff] %v2328_v40  ;;  %2331 = vst [vmem:[%s4534_s25 + $0x40] sm:$0xff] %v2330_v20  ;;  %v2420_v60 = vld [vmem:[%s3645_s29 + $0x188] sm:$0xff]  ;;  %v2422_v35 = vld [vmem:[%s3645_s29 + $0x190] sm:$0xff] }
 0xa08   : > { %2361 = vst [vmem:[%s4534_s25 + $0x128] sm:$0xff] %v2360_v54  ;;  %2363 = vst [vmem:[%s4534_s25 + $0x140] sm:$0xff] %v2362_v37  ;;  %v2424_v4 = vld [vmem:[%s3645_s29 + $0x198] sm:$0xff]  ;;  %v2426_v14 = vld [vmem:[%s3645_s29 + $0x1a0] sm:$0xff] }
 0xa09   : > { %2365 = vst [vmem:[%s4534_s25 + $0x148] sm:$0xff] %v2364_v3  ;;  %2367 = vst [vmem:[%s4534_s25 + $0x160] sm:$0xff] %v2366_v38  ;;  %v2428_v7 = vld [vmem:[%s3645_s29 + $0x1a8] sm:$0xff]  ;;  %v2430_v21 = vld [vmem:[%s3645_s29 + $0x1b0] sm:$0xff] }
 0xa0a   : > { %2369 = vst [vmem:[%s4534_s25 + $0x168] sm:$0xff] %v2368_v49  ;;  %2371 = vst [vmem:[%s4534_s25 + $0x180] sm:$0xff] %v2370_v23  ;;  %v2432_v45 = vld [vmem:[%s3645_s29 + $0x1b8] sm:$0xff]  ;;  %v2434_v62 = vld [vmem:[%s3645_s29 + $0x1c0] sm:$0xff] }
 0xa0b   : > { %2373 = vst [vmem:[%s4534_s25 + $0x188] sm:$0xff] %v2372_v61  ;;  %2375 = vst [vmem:[%s4534_s25 + $0x1a0] sm:$0xff] %v2374_v11  ;;  %v2436_v13 = vld [vmem:[%s3645_s29 + $0x1c8] sm:$0xff]  ;;  %v2438_v27 = vld [vmem:[%s3645_s29 + $0x1d0] sm:$0xff] }
 0xa0c   : > { %2377 = vst [vmem:[%s4534_s25 + $0x1a8] sm:$0xff] %v2376_v18  ;;  %2379 = vst [vmem:[%s4534_s25 + $0x1c0] sm:$0xff] %v2378_v10  ;;  %v2440_v52 = vld [vmem:[%s3645_s29 + $0x1d8] sm:$0xff]  ;;  %v2442_v1 = vld [vmem:[%s3645_s29 + $0x1e0] sm:$0xff] }
 0xa0d   : > { %2381 = vst [vmem:[%s4534_s25 + $0x1c8] sm:$0xff] %v2380_v12  ;;  %2383 = vst [vmem:[%s4534_s25 + $0x1e0] sm:$0xff] %v2382_v9  ;;  %v2444_v24 = vld [vmem:[%s3645_s29 + $0x1e8] sm:$0xff]  ;;  %v2446_v51 = vld [vmem:[%s3645_s29 + $0x1f0] sm:$0xff] }
 0xa0e   : > { %2385 = vst [vmem:[%s4534_s25 + $0x1e8] sm:$0xff] %v2384_v15  ;;  %2387 = vst [vmem:[%s4534_s25 + $0x200] sm:$0xff] %v2386_v53  ;;  %v2448_v17 = vld [vmem:[%s3645_s29 + $0x1f8] sm:$0xff] }
 0xa0f   : > { %2389 = vst [vmem:[%s4534_s25 + $0x208] sm:$0xff] %v2388_v8  ;;  %2391 = vst [vmem:[%s4534_s25 + $0x220] sm:$0xff] %v2390_v63 }
 0xa10   : > { %2393 = vst [vmem:[%s4534_s25 + $0x228] sm:$0xff] %v2392_v55  ;;  %2395 = vst [vmem:[%s4534_s25 + $0x240] sm:$0xff] %v2394_v59 }
 0xa11   : > { %2397 = vst [vmem:[%s4534_s25 + $0x248] sm:$0xff] %v2396_v29  ;;  %2399 = vst [vmem:[%s4534_s25 + $0x260] sm:$0xff] %v2398_v33 }
 0xa12   : > { %2401 = vst [vmem:[%s4534_s25 + $0x268] sm:$0xff] %v2400_v31  ;;  %2403 = vst [vmem:[%s4534_s25 + $0x280] sm:$0xff] %v2402_v56 }
 0xa13   : > { %2405 = vst [vmem:[%s4534_s25 + $0x288] sm:$0xff] %v2404_v47  ;;  %2407 = vst [vmem:[%s4534_s25 + $0x2a0] sm:$0xff] %v2406_v2 }
 0xa14   : > { %2409 = vst [vmem:[%s4534_s25 + $0x2a8] sm:$0xff] %v2408_v42  ;;  %2411 = vst [vmem:[%s4534_s25 + $0x2c0] sm:$0xff] %v2410_v6 }
 0xa15   : > { %2413 = vst [vmem:[%s4534_s25 + $0x2c8] sm:$0xff] %v2412_v26  ;;  %2415 = vst [vmem:[%s4534_s25 + $0x2e0] sm:$0xff] %v2414_v5 }
 0xa16   : > { %2417 = vst [vmem:[%s4534_s25 + $0x2e8] sm:$0xff] %v2416_v0  ;;  %2419 = vst [vmem:[%s4534_s25 + $0x300] sm:$0xff] %v2418_v58 }
 0xa17   : > { %2421 = vst [vmem:[%s4534_s25 + $0x308] sm:$0xff] %v2420_v60  ;;  %2423 = vst [vmem:[%s4534_s25 + $0x320] sm:$0xff] %v2422_v35 }
 0xa18   : > { %2425 = vst [vmem:[%s4534_s25 + $0x328] sm:$0xff] %v2424_v4  ;;  %2427 = vst [vmem:[%s4534_s25 + $0x340] sm:$0xff] %v2426_v14 }
 0xa19   : > { %2429 = vst [vmem:[%s4534_s25 + $0x348] sm:$0xff] %v2428_v7  ;;  %2431 = vst [vmem:[%s4534_s25 + $0x360] sm:$0xff] %v2430_v21 }
 0xa1a   : > { %2433 = vst [vmem:[%s4534_s25 + $0x368] sm:$0xff] %v2432_v45  ;;  %2435 = vst [vmem:[%s4534_s25 + $0x380] sm:$0xff] %v2434_v62 }
 0xa1b   : > { %2437 = vst [vmem:[%s4534_s25 + $0x388] sm:$0xff] %v2436_v13  ;;  %2439 = vst [vmem:[%s4534_s25 + $0x3a0] sm:$0xff] %v2438_v27 }
 0xa1c   : > { %2441 = vst [vmem:[%s4534_s25 + $0x3a8] sm:$0xff] %v2440_v52  ;;  %2443 = vst [vmem:[%s4534_s25 + $0x3c0] sm:$0xff] %v2442_v1 }
 0xa1d   : > { %2445 = vst [vmem:[%s4534_s25 + $0x3c8] sm:$0xff] %v2444_v24  ;;  %2447 = vst [vmem:[%s4534_s25 + $0x3e0] sm:$0xff] %v2446_v51 }
 0xa1e   : > { %2449 = vst [vmem:[%s4534_s25 + $0x3e8] sm:$0xff] %v2448_v17 }
 0xa1f PF: > { %2455 = sbr.rel (!%p3151_p5) target bundleno = 2625 (0xa41), region = 122  ;;  %s2786_s26 = sshll.u32 (%p3151_p5), %s3136_s16, 4  ;;  %v2471_v43 = vld [vmem:[%s4403_s28] sm:$0xff] (%p3151_p5)  ;;  %v2473_v36 = vld [vmem:[%s4403_s28 + $0x8] sm:$0xff] (%p3151_p5)  ;;  %v2475_v50 = vld [vmem:[%s4403_s28 + $0x10] sm:$0xff] (%p3151_p5) }
 0xa20   : > { %s4670_s24 = scalar_lea.vmem (%p3151_p5), %s4821_s14, %s2786_s26  ;;  %v2477_v40 = vld [vmem:[%s4403_s28 + $0x18] sm:$0xff] (%p3151_p5)  ;;  %v2479_v20 = vld [vmem:[%s4403_s28 + $0x20] sm:$0xff] (%p3151_p5)  ;;  %v2481_v46 = vld [vmem:[%s4403_s28 + $0x28] sm:$0xff] (%p3151_p5) }
 0xa21   : > { %2472 = vst [vmem:[%s4670_s24] sm:$0xff] (%p3151_p5), %v2471_v43  ;;  %2474 = vst [vmem:[%s4670_s24 + $0x8] sm:$0xff] (%p3151_p5), %v2473_v36  ;;  %v2483_v48 = vld [vmem:[%s4403_s28 + $0x30] sm:$0xff] (%p3151_p5)  ;;  %v2485_v30 = vld [vmem:[%s4403_s28 + $0x38] sm:$0xff] (%p3151_p5) }
 0xa22   : > { %2476 = vst [vmem:[%s4670_s24 + $0x20] sm:$0xff] (%p3151_p5), %v2475_v50  ;;  %2478 = vst [vmem:[%s4670_s24 + $0x28] sm:$0xff] (%p3151_p5), %v2477_v40  ;;  %v2487_v16 = vld [vmem:[%s4403_s28 + $0x40] sm:$0xff] (%p3151_p5)  ;;  %v2489_v22 = vld [vmem:[%s4403_s28 + $0x48] sm:$0xff] (%p3151_p5) }
 0xa23   : > { %2480 = vst [vmem:[%s4670_s24 + $0x40] sm:$0xff] (%p3151_p5), %v2479_v20  ;;  %2482 = vst [vmem:[%s4670_s24 + $0x48] sm:$0xff] (%p3151_p5), %v2481_v46  ;;  %v2491_v39 = vld [vmem:[%s4403_s28 + $0x50] sm:$0xff] (%p3151_p5)  ;;  %v2493_v34 = vld [vmem:[%s4403_s28 + $0x58] sm:$0xff] (%p3151_p5) }
 0xa24   : > { %2484 = vst [vmem:[%s4670_s24 + $0x60] sm:$0xff] (%p3151_p5), %v2483_v48  ;;  %2486 = vst [vmem:[%s4670_s24 + $0x68] sm:$0xff] (%p3151_p5), %v2485_v30  ;;  %v2495_v19 = vld [vmem:[%s4403_s28 + $0x60] sm:$0xff] (%p3151_p5)  ;;  %v2497_v41 = vld [vmem:[%s4403_s28 + $0x68] sm:$0xff] (%p3151_p5) }
 0xa25   : > { %2488 = vst [vmem:[%s4670_s24 + $0x80] sm:$0xff] (%p3151_p5), %v2487_v16  ;;  %2490 = vst [vmem:[%s4670_s24 + $0x88] sm:$0xff] (%p3151_p5), %v2489_v22  ;;  %v2499_v25 = vld [vmem:[%s4403_s28 + $0x70] sm:$0xff] (%p3151_p5)  ;;  %v2501_v28 = vld [vmem:[%s4403_s28 + $0x78] sm:$0xff] (%p3151_p5) }
 0xa26   : > { %2492 = vst [vmem:[%s4670_s24 + $0xa0] sm:$0xff] %v2491_v39  ;;  %2494 = vst [vmem:[%s4670_s24 + $0xa8] sm:$0xff] %v2493_v34  ;;  %v2503_v44 = vld [vmem:[%s4403_s28 + $0x80] sm:$0xff]  ;;  %v2505_v32 = vld [vmem:[%s4403_s28 + $0x88] sm:$0xff] }
 0xa27   : > { %2496 = vst [vmem:[%s4670_s24 + $0xc0] sm:$0xff] %v2495_v19  ;;  %2498 = vst [vmem:[%s4670_s24 + $0xc8] sm:$0xff] %v2497_v41  ;;  %v2507_v57 = vld [vmem:[%s4403_s28 + $0x90] sm:$0xff]  ;;  %v2509_v54 = vld [vmem:[%s4403_s28 + $0x98] sm:$0xff] }
 0xa28   : > { %2500 = vst [vmem:[%s4670_s24 + $0xe0] sm:$0xff] %v2499_v25  ;;  %2502 = vst [vmem:[%s4670_s24 + $0xe8] sm:$0xff] %v2501_v28  ;;  %v2511_v37 = vld [vmem:[%s4403_s28 + $0xa0] sm:$0xff]  ;;  %v2513_v3 = vld [vmem:[%s4403_s28 + $0xa8] sm:$0xff] }
 0xa29   : > { %2504 = vst [vmem:[%s4670_s24 + $0x100] sm:$0xff] %v2503_v44  ;;  %2506 = vst [vmem:[%s4670_s24 + $0x108] sm:$0xff] %v2505_v32  ;;  %v2515_v38 = vld [vmem:[%s4403_s28 + $0xb0] sm:$0xff]  ;;  %v2517_v49 = vld [vmem:[%s4403_s28 + $0xb8] sm:$0xff] }
 0xa2a   : > { %2508 = vst [vmem:[%s4670_s24 + $0x120] sm:$0xff] %v2507_v57  ;;  %2510 = vst [vmem:[%s4670_s24 + $0x128] sm:$0xff] %v2509_v54  ;;  %v2519_v23 = vld [vmem:[%s4403_s28 + $0xc0] sm:$0xff]  ;;  %v2521_v61 = vld [vmem:[%s4403_s28 + $0xc8] sm:$0xff] }
 0xa2b   : > { %2512 = vst [vmem:[%s4670_s24 + $0x140] sm:$0xff] %v2511_v37  ;;  %2514 = vst [vmem:[%s4670_s24 + $0x148] sm:$0xff] %v2513_v3  ;;  %v2523_v11 = vld [vmem:[%s4403_s28 + $0xd0] sm:$0xff]  ;;  %v2525_v18 = vld [vmem:[%s4403_s28 + $0xd8] sm:$0xff] }
 0xa2c   : > { %2516 = vst [vmem:[%s4670_s24 + $0x160] sm:$0xff] %v2515_v38  ;;  %2518 = vst [vmem:[%s4670_s24 + $0x168] sm:$0xff] %v2517_v49  ;;  %v2527_v10 = vld [vmem:[%s4403_s28 + $0xe0] sm:$0xff]  ;;  %v2529_v12 = vld [vmem:[%s4403_s28 + $0xe8] sm:$0xff] }
 0xa2d   : > { %2520 = vst [vmem:[%s4670_s24 + $0x180] sm:$0xff] %v2519_v23  ;;  %2522 = vst [vmem:[%s4670_s24 + $0x188] sm:$0xff] %v2521_v61  ;;  %v2531_v9 = vld [vmem:[%s4403_s28 + $0xf0] sm:$0xff]  ;;  %v2533_v15 = vld [vmem:[%s4403_s28 + $0xf8] sm:$0xff] }
 0xa2e   : > { %2524 = vst [vmem:[%s4670_s24 + $0x1a0] sm:$0xff] %v2523_v11  ;;  %2526 = vst [vmem:[%s4670_s24 + $0x1a8] sm:$0xff] %v2525_v18  ;;  %v2535_v53 = vld [vmem:[%s4403_s28 + $0x100] sm:$0xff]  ;;  %v2537_v8 = vld [vmem:[%s4403_s28 + $0x108] sm:$0xff] }
 0xa2f   : > { %2528 = vst [vmem:[%s4670_s24 + $0x1c0] sm:$0xff] %v2527_v10  ;;  %2530 = vst [vmem:[%s4670_s24 + $0x1c8] sm:$0xff] %v2529_v12  ;;  %v2539_v63 = vld [vmem:[%s4403_s28 + $0x110] sm:$0xff]  ;;  %v2541_v55 = vld [vmem:[%s4403_s28 + $0x118] sm:$0xff] }
 0xa30   : > { %2532 = vst [vmem:[%s4670_s24 + $0x1e0] sm:$0xff] %v2531_v9  ;;  %2534 = vst [vmem:[%s4670_s24 + $0x1e8] sm:$0xff] %v2533_v15  ;;  %v2543_v59 = vld [vmem:[%s4403_s28 + $0x120] sm:$0xff]  ;;  %v2545_v29 = vld [vmem:[%s4403_s28 + $0x128] sm:$0xff] }
 0xa31   : > { %2536 = vst [vmem:[%s4670_s24 + $0x200] sm:$0xff] %v2535_v53  ;;  %2538 = vst [vmem:[%s4670_s24 + $0x208] sm:$0xff] %v2537_v8  ;;  %v2547_v33 = vld [vmem:[%s4403_s28 + $0x130] sm:$0xff]  ;;  %v2549_v31 = vld [vmem:[%s4403_s28 + $0x138] sm:$0xff] }
 0xa32   : > { %2540 = vst [vmem:[%s4670_s24 + $0x220] sm:$0xff] %v2539_v63  ;;  %2542 = vst [vmem:[%s4670_s24 + $0x228] sm:$0xff] %v2541_v55  ;;  %v2551_v56 = vld [vmem:[%s4403_s28 + $0x140] sm:$0xff]  ;;  %v2553_v47 = vld [vmem:[%s4403_s28 + $0x148] sm:$0xff] }
 0xa33   : > { %2544 = vst [vmem:[%s4670_s24 + $0x240] sm:$0xff] %v2543_v59  ;;  %2546 = vst [vmem:[%s4670_s24 + $0x248] sm:$0xff] %v2545_v29  ;;  %v2555_v2 = vld [vmem:[%s4403_s28 + $0x150] sm:$0xff]  ;;  %v2557_v42 = vld [vmem:[%s4403_s28 + $0x158] sm:$0xff] }
 0xa34   : > { %2548 = vst [vmem:[%s4670_s24 + $0x260] sm:$0xff] %v2547_v33  ;;  %2550 = vst [vmem:[%s4670_s24 + $0x268] sm:$0xff] %v2549_v31  ;;  %v2559_v6 = vld [vmem:[%s4403_s28 + $0x160] sm:$0xff]  ;;  %v2561_v26 = vld [vmem:[%s4403_s28 + $0x168] sm:$0xff] }
 0xa35   : > { %2552 = vst [vmem:[%s4670_s24 + $0x280] sm:$0xff] %v2551_v56  ;;  %2554 = vst [vmem:[%s4670_s24 + $0x288] sm:$0xff] %v2553_v47  ;;  %v2563_v5 = vld [vmem:[%s4403_s28 + $0x170] sm:$0xff]  ;;  %v2565_v0 = vld [vmem:[%s4403_s28 + $0x178] sm:$0xff] }
 0xa36   : > { %2556 = vst [vmem:[%s4670_s24 + $0x2a0] sm:$0xff] %v2555_v2  ;;  %2558 = vst [vmem:[%s4670_s24 + $0x2a8] sm:$0xff] %v2557_v42  ;;  %v2567_v58 = vld [vmem:[%s4403_s28 + $0x180] sm:$0xff]  ;;  %v2569_v60 = vld [vmem:[%s4403_s28 + $0x188] sm:$0xff] }
 0xa37   : > { %2560 = vst [vmem:[%s4670_s24 + $0x2c0] sm:$0xff] %v2559_v6  ;;  %2562 = vst [vmem:[%s4670_s24 + $0x2c8] sm:$0xff] %v2561_v26  ;;  %v2571_v35 = vld [vmem:[%s4403_s28 + $0x190] sm:$0xff]  ;;  %v2573_v4 = vld [vmem:[%s4403_s28 + $0x198] sm:$0xff] }
 0xa38   : > { %2564 = vst [vmem:[%s4670_s24 + $0x2e0] sm:$0xff] %v2563_v5  ;;  %2566 = vst [vmem:[%s4670_s24 + $0x2e8] sm:$0xff] %v2565_v0  ;;  %v2575_v14 = vld [vmem:[%s4403_s28 + $0x1a0] sm:$0xff]  ;;  %v2577_v7 = vld [vmem:[%s4403_s28 + $0x1a8] sm:$0xff] }
 0xa39   : > { %2568 = vst [vmem:[%s4670_s24 + $0x300] sm:$0xff] %v2567_v58  ;;  %2570 = vst [vmem:[%s4670_s24 + $0x308] sm:$0xff] %v2569_v60  ;;  %v2579_v21 = vld [vmem:[%s4403_s28 + $0x1b0] sm:$0xff]  ;;  %v2581_v45 = vld [vmem:[%s4403_s28 + $0x1b8] sm:$0xff] }
 0xa3a   : > { %2572 = vst [vmem:[%s4670_s24 + $0x320] sm:$0xff] %v2571_v35  ;;  %2574 = vst [vmem:[%s4670_s24 + $0x328] sm:$0xff] %v2573_v4  ;;  %v2583_v62 = vld [vmem:[%s4403_s28 + $0x1c0] sm:$0xff]  ;;  %v2585_v13 = vld [vmem:[%s4403_s28 + $0x1c8] sm:$0xff] }
 0xa3b   : > { %2576 = vst [vmem:[%s4670_s24 + $0x340] sm:$0xff] %v2575_v14  ;;  %2578 = vst [vmem:[%s4670_s24 + $0x348] sm:$0xff] %v2577_v7  ;;  %v2587_v27 = vld [vmem:[%s4403_s28 + $0x1d0] sm:$0xff]  ;;  %v2589_v52 = vld [vmem:[%s4403_s28 + $0x1d8] sm:$0xff] }
 0xa3c   : > { %2580 = vst [vmem:[%s4670_s24 + $0x360] sm:$0xff] %v2579_v21  ;;  %2582 = vst [vmem:[%s4670_s24 + $0x368] sm:$0xff] %v2581_v45  ;;  %v2591_v1 = vld [vmem:[%s4403_s28 + $0x1e0] sm:$0xff]  ;;  %v2593_v24 = vld [vmem:[%s4403_s28 + $0x1e8] sm:$0xff] }
 0xa3d   : > { %2584 = vst [vmem:[%s4670_s24 + $0x380] sm:$0xff] %v2583_v62  ;;  %2586 = vst [vmem:[%s4670_s24 + $0x388] sm:$0xff] %v2585_v13  ;;  %v2595_v51 = vld [vmem:[%s4403_s28 + $0x1f0] sm:$0xff]  ;;  %v2597_v17 = vld [vmem:[%s4403_s28 + $0x1f8] sm:$0xff] }
 0xa3e   : > { %2588 = vst [vmem:[%s4670_s24 + $0x3a0] sm:$0xff] %v2587_v27  ;;  %2590 = vst [vmem:[%s4670_s24 + $0x3a8] sm:$0xff] %v2589_v52 }
 0xa3f   : > { %2592 = vst [vmem:[%s4670_s24 + $0x3c0] sm:$0xff] %v2591_v1  ;;  %2594 = vst [vmem:[%s4670_s24 + $0x3c8] sm:$0xff] %v2593_v24 }
 0xa40   : > { %2596 = vst [vmem:[%s4670_s24 + $0x3e0] sm:$0xff] %v2595_v51  ;;  %2598 = vst [vmem:[%s4670_s24 + $0x3e8] sm:$0xff] %v2597_v17 }
 0xa41 PF: > { %p22_p10 = scmp.ge.s32.totalorder %s3139_s17, 4   ;;  %s4950_s29 = smov %s3033_s30 }
 0xa42   : > { %s4951_s30 = smov %s3149_s20  ;;  %s4952_s15 = smov %s3139_s17 }
 0xa43   :  { %24 = sbr.rel (!%p22_p10) target bundleno = 2 (0x2), region = 194 }

</bundles_post_ra>
